<compile_context>
chip_gen: v7x
topology: tpu7x:2x2x1
jax: 0.10.0
libtpu: 0.0.40
codegen_flags: <defaults>
</compile_context>

<pallas_src>
import jax
import jax.numpy as jnp
from jax.experimental import pallas as pl
from jax.experimental.pallas import tpu as pltpu


# --------------------------------------------------------------------------------------
# model hyper-parameters (the "opt" object), kept small
# --------------------------------------------------------------------------------------
VOCAB_SIZE = 10          # opt.vocab_size
ENC_SIZE = 32            # opt.input_encoding_size (== rnn_size, required by xt = h + fc + wt)
RNN_SIZE = 32            # opt.rnn_size
NUM_LAYERS = 1           # opt.num_layers
SEQ_LENGTH = 8           # opt.seq_length
FC_FEAT_SIZE = 64        # opt.fc_feat_size (== bu_feat_size because fc = mean(bu))
BU_FEAT_SIZE = 64        # opt.bu_feat_size
BU_SIZE = 8              # opt.bu_size
ATT_HID = 32             # attention hidden size of the core
BATCH = 2

V1 = VOCAB_SIZE + 1
V_PAD = 128              # vocab dim padded to a full lane width for unmasked stores
T_STEPS = SEQ_LENGTH + 1

assert ENC_SIZE == RNN_SIZE, "xt = prev_h + fc_feats + wt requires input_encoding_size == rnn_size"
assert 4 * RNN_SIZE <= 128 and ATT_HID <= 128 and V1 <= V_PAD


# --------------------------------------------------------------------------------------
# Pallas kernel: the whole forward pass in one invocation
# --------------------------------------------------------------------------------------
def topdown_kernel(
    wt_ref,        # (T*B, E)        word embeddings for every step, flattened (resident)
    bu_ref,        # (B, N, F)       raw bottom-up features
    w_feat_ref,    # (2, F, R)       [0]=W_img, [1]=W_att
    w_va_ref,      # (R, A)          attention key projection of bu_emb
    w_hf_ref,      # (R, 4R + A)     fused h weights: [W_x + W_h | W_ha]
    w_ag_ref,      # (R, 4R)         gate weight for the attention vector
    w_x_ref,       # (R, 4R)         gate weight for xt (used only in the batched precompute)
    w_out_ref,     # (R, V_PAD)      output projection (zero-padded beyond V1)
    bias_ref,      # (8, 128)        packed biases (see wrapper)
    out_ref,       # (T*B, V_PAD)    log-probs (dense slab)
):
    R, A, T = RNN_SIZE, ATT_HID, T_STEPS
    B, N, F = bu_ref.shape

    # ---- load / unpack weights once (hoisted out of the time loop) ----
    bu = bu_ref[...]                                           # (B, N, F)
    w_img = w_feat_ref[0]                                      # (F, R)
    w_att = w_feat_ref[1]                                      # (F, R)
    w_va = w_va_ref[...]                                       # (R, A)
    w_hf = w_hf_ref[...]                                       # (R, 4R + A)
    w_ag = w_ag_ref[...]                                       # (R, 4R)
    w_x = w_x_ref[...]                                         # (R, 4R)
    w_out = w_out_ref[...]                                     # (R, V_PAD)
    b_img = bias_ref[0:1, 0:R]                                 # (1, R)
    b_att = bias_ref[1:2, 0:R]                                 # (1, R)
    b_a = bias_ref[2:3, 0:A]                                   # (1, A)
    w_a_b = bias_ref[3:4, 0:A][None, :, :]                     # (1, 1, A) attention score vec
    b_g = bias_ref[4:5, 0:4 * R]                               # (1, 4R)
    b_out = bias_ref[5:6, :]                                   # (1, V_PAD); padded lanes = -1e30

    # ---- time-invariant feature embedding (== get_fc_feats + embed_feats + init_hidden) ----
    fc = jnp.mean(bu, axis=1)                                  # (B, F)
    fc_emb = jnp.maximum(
        jnp.dot(fc, w_img, preferred_element_type=jnp.float32) + b_img, 0.0)        # (B, R)
    bu_flat = bu.reshape(B * N, F)
    bu_emb_flat = jnp.maximum(
        jnp.dot(bu_flat, w_att, preferred_element_type=jnp.float32) + b_att, 0.0)   # (B*N, R)
    bu_emb = bu_emb_flat.reshape(B, N, R)                      # hoisted 3-D view
    # hoisted: attention projection of the (constant) embedded bu feats; b_a folded in here
    bu_proj = (jnp.dot(bu_emb_flat, w_va, preferred_element_type=jnp.float32)
               + b_a).reshape(B, N, A)                          # (B, N, A)

    # ---- time-known gate contribution, batched over all T steps (off the serial path) ----
    # gates_t = (h + fc_emb + wt_t) @ W_x + att_t @ W_ag + h @ W_h + b_g
    #         = h @ (W_x + W_h) + att_t @ W_ag + [(fc_emb + wt_t) @ W_x + b_g]
    wt_all = wt_ref[...]                                        # (T*B, E == R)
    fc_rep = jnp.concatenate([fc_emb] * T, axis=0)              # (T*B, R)
    pre_g = jnp.dot(wt_all + fc_rep, w_x,
                    preferred_element_type=jnp.float32) + b_g   # (T*B, 4R)

    # init_hidden: every state tensor initialized from the embedded fc feats
    h = fc_emb
    c = fc_emb
    h_list = []

    # ---- unrolled recurrence over seq_length + 1 steps ----
    # TODO(synk): switch to lax.fori_loop with carried (h, c) if SEQ_LENGTH grows beyond a few dozen
    for t in range(T):
        # single MXU pass for everything that only consumes h:
        #   cols [0 : 4R)       -> h-part of the LSTM gates   (lane-tile aligned)
        #   cols [4R : 4R + A)  -> attention query h @ W_ha
        hm = jnp.dot(h, w_hf, preferred_element_type=jnp.float32)                    # (B, 4R + A)
        h_gate = hm[:, :4 * R]                                                        # (B, 4R)
        h_proj = hm[:, 4 * R:]                                                        # (B, A)

        # top-down attention over bu features (conditioned on prev hidden)
        att_hidden = jnp.tanh(bu_proj + h_proj[:, None, :])                           # (B, N, A)
        e = jnp.sum(att_hidden * w_a_b, axis=-1)                                      # (B, N)
        ex = jnp.exp(e)                    # bounded: |e| <= sum(|w_a|), no max-subtraction needed
        alpha = ex * pl.reciprocal(jnp.sum(ex, axis=1, keepdims=True), approx=True)   # softmax
        att = jnp.sum(alpha[:, :, None] * bu_emb, axis=1)                             # (B, R)

        # LSTM gates: attention part + h part (already computed) + precomputed known part
        gates = (jnp.dot(att, w_ag, preferred_element_type=jnp.float32)
                 + h_gate + pre_g[t * B:(t + 1) * B, :])                               # (B, 4R)
        i_g = jax.nn.sigmoid(gates[:, 0 * R:1 * R])
        f_g = jax.nn.sigmoid(gates[:, 1 * R:2 * R])
        o_g = jax.nn.sigmoid(gates[:, 2 * R:3 * R])
        g_g = jnp.tanh(gates[:, 3 * R:4 * R])
        c = f_g * c + i_g * g_g
        h = o_g * jnp.tanh(c)
        h_list.append(h)

    # ---- vocab head + log_softmax for ALL steps in one batched pass (off the serial path) ----
    h_all = jnp.concatenate(h_list, axis=0)                                            # (T*B, R)
    logits = jnp.dot(h_all, w_out, preferred_element_type=jnp.float32) + b_out         # (T*B, V_PAD)
    m = jnp.max(logits, axis=1, keepdims=True)
    lse = jnp.log(jnp.sum(jnp.exp(logits - m), axis=1, keepdims=True)) + m
    out_ref[...] = (logits - lse).astype(out_ref.dtype)                                # dense store


# --------------------------------------------------------------------------------------
# wrapper
# --------------------------------------------------------------------------------------
def topdown_atten_forward(bu_feats, labels, params):
    """bu_feats: (B, N, F) f32, labels: (B, seq_length) int32 -> (B, T, V1) f32 logprobs."""
    B, N, F = bu_feats.shape
    E, R, A = ENC_SIZE, RNN_SIZE, ATT_HID
    T = T_STEPS

    # word embeddings for every step (glue): t=0 uses embed(0), t>=1 uses embed(labels[:, t-1])
    embed_tbl = params["embed"]                              # (V1, E)
    wt0 = jnp.broadcast_to(embed_tbl[0], (B, E))             # (B, E)
    wt_rest = jnp.transpose(embed_tbl[labels], (1, 0, 2))    # (seq_length, B, E)
    wt_seq = jnp.concatenate([wt0[None], wt_rest], axis=0).reshape(T * B, E)   # (T*B, E) dense

    # ---- pack parameters into lane-friendly slabs ----
    w_feat = jnp.stack([params["w_img"], params["w_att"]], axis=0)                  # (2, F, R)
    # fused h weights: gates h-part first (lane-tile aligned at 4R=128), attention query second
    w_hf = jnp.concatenate([params["w_x"] + params["w_h"], params["w_ha"]], axis=1)  # (R, 4R+A)
    w_out_pad = jnp.zeros((R, V_PAD), jnp.float32).at[:, :V1].set(params["w_out"])   # (R, 128)

    biases = jnp.zeros((8, 128), jnp.float32)
    biases = biases.at[0, :R].set(params["b_img"][0])
    biases = biases.at[1, :R].set(params["b_att"][0])
    biases = biases.at[2, :A].set(params["b_a"][0])
    biases = biases.at[3, :A].set(params["w_a"][0])
    biases = biases.at[4, :4 * R].set(params["b_g"][0])
    b_out_row = jnp.full((V_PAD,), -1e30, jnp.float32).at[:V1].set(params["b_out"][0])
    biases = biases.at[5, :].set(b_out_row)   # -1e30 on padded lanes -> masked out of log_softmax

    grid_spec = pltpu.PrefetchScalarGridSpec(
        num_scalar_prefetch=0,
        grid=(1,),                                             # single invocation; loop is in-kernel
        in_specs=[
            pl.BlockSpec((T * B, E), lambda i: (0, 0)),        # wt (fully resident, sublane-dense)
            pl.BlockSpec((B, N, F), lambda i: (0, 0, 0)),      # bu_feats
            pl.BlockSpec((2, F, R), lambda i: (0, 0, 0)),      # W_img / W_att
            pl.BlockSpec((R, A), lambda i: (0, 0)),            # W_va
            pl.BlockSpec((R, 4 * R + A), lambda i: (0, 0)),    # fused [W_x+W_h | W_ha]
            pl.BlockSpec((R, 4 * R), lambda i: (0, 0)),        # W_ag
            pl.BlockSpec((R, 4 * R), lambda i: (0, 0)),        # W_x (for the batched precompute)
            pl.BlockSpec((R, V_PAD), lambda i: (0, 0)),        # W_out (padded)
            pl.BlockSpec((8, 128), lambda i: (0, 0)),          # packed biases
        ],
        out_specs=pl.BlockSpec((T * B, V_PAD), lambda i: (0, 0)),
    )

    out_flat = pl.pallas_call(
        topdown_kernel,
        out_shape=jax.ShapeDtypeStruct((T * B, V_PAD), jnp.float32),
        grid_spec=grid_spec,
        compiler_params=pltpu.CompilerParams(
            dimension_semantics=("arbitrary",)),               # recurrence is sequential in-kernel
    )(wt_seq, bu_feats, w_feat, params["w_va"], w_hf, params["w_ag"], params["w_x"],
      w_out_pad, biases)

    # drop the padded vocab lanes; torch cats logprobs along dim 1 -> (B, T, V1)
    out_tbv = out_flat.reshape(T, B, V_PAD)[:, :, :V1]
    return jnp.transpose(out_tbv, (1, 0, 2))


# --------------------------------------------------------------------------------------
# deterministic parameter init
# --------------------------------------------------------------------------------------
def init_params(key):
    ks = jax.random.split(key, 16)
    E, R, A, F = ENC_SIZE, RNN_SIZE, ATT_HID, FC_FEAT_SIZE

    def xavier(k, fan_in, fan_out, shape):
        std = (2.0 / (fan_in + fan_out)) ** 0.5
        return std * jax.random.normal(k, shape, dtype=jnp.float32)

    return {
        "embed": 0.1 * jax.random.normal(ks[0], (V1, E), dtype=jnp.float32),
        "w_img": xavier(ks[1], F, R, (F, R)),                          # img_embed (xavier_normal)
        "b_img": jnp.zeros((1, R), jnp.float32),
        "w_att": xavier(ks[2], BU_FEAT_SIZE, R, (BU_FEAT_SIZE, R)),    # att_embed
        "b_att": jnp.zeros((1, R), jnp.float32),
        "w_va": xavier(ks[3], R, A, (R, A)),
        "w_ha": xavier(ks[4], R, A, (R, A)),
        "b_a": jnp.zeros((1, A), jnp.float32),
        "w_a": xavier(ks[5], A, 1, (1, A)),
        "w_x": xavier(ks[6], R, 4 * R, (R, 4 * R)),
        "w_ag": xavier(ks[7], R, 4 * R, (R, 4 * R)),
        "w_h": xavier(ks[8], R, 4 * R, (R, 4 * R)),
        "b_g": jnp.zeros((1, 4 * R), jnp.float32),
        "w_out": xavier(ks[9], R, V1, (R, V1)),
        "b_out": jnp.zeros((1, V1), jnp.float32),
    }


if __name__ == "__main__":
    key = jax.random.PRNGKey(0)
    k_p, k_bu, k_lab = jax.random.split(key, 3)

    params = init_params(k_p)
    bu_feats = jax.random.normal(k_bu, (BATCH, BU_SIZE, BU_FEAT_SIZE), dtype=jnp.float32)
    # nonzero labels -> the torch early-break never triggers, full seq_length+1 steps produced
    labels = jax.random.randint(k_lab, (BATCH, SEQ_LENGTH), 1, VOCAB_SIZE + 1, dtype=jnp.int32)

    out = topdown_atten_forward(bu_feats, labels, params)   # (B, seq_length+1, vocab+1)
    jax.block_until_ready(out)
    assert out.shape == (BATCH, T_STEPS, V1)
    assert bool(jnp.all(jnp.isfinite(out)))
    print("KERNEL_OK")
</pallas_src>

<mosaic_0001>
module attributes {stable_mosaic.version = 11 : i64} {
  func.func @topdown_kernel(%arg0: i32, %arg1: memref<18x32xf32, #tpu.memory_space<vmem>>, %arg2: memref<2x8x64xf32, #tpu.memory_space<vmem>>, %arg3: memref<2x64x32xf32, #tpu.memory_space<vmem>>, %arg4: memref<32x32xf32, #tpu.memory_space<vmem>>, %arg5: memref<32x160xf32, #tpu.memory_space<vmem>>, %arg6: memref<32x128xf32, #tpu.memory_space<vmem>>, %arg7: memref<32x128xf32, #tpu.memory_space<vmem>>, %arg8: memref<32x128xf32, #tpu.memory_space<vmem>>, %arg9: memref<8x128xf32, #tpu.memory_space<vmem>>, %arg10: memref<18x128xf32, #tpu.memory_space<vmem>>) attributes {dimension_semantics = [#tpu.dimension_semantics<arbitrary>], iteration_bounds = array<i64: 1>, scalar_prefetch = 0 : i64, scratch_operands = 0 : i64, tpu.core_type = #tpu.core_type<tc>, window_params = [{pipeline_mode = #tpu.pipeline_mode<synchronous>, transform_indices = @transform_0, window_bounds = array<i64: 18, 32>}, {pipeline_mode = #tpu.pipeline_mode<synchronous>, transform_indices = @transform_1, window_bounds = array<i64: 2, 8, 64>}, {pipeline_mode = #tpu.pipeline_mode<synchronous>, transform_indices = @transform_2, window_bounds = array<i64: 2, 64, 32>}, {pipeline_mode = #tpu.pipeline_mode<synchronous>, transform_indices = @transform_3, window_bounds = array<i64: 32, 32>}, {pipeline_mode = #tpu.pipeline_mode<synchronous>, transform_indices = @transform_4, window_bounds = array<i64: 32, 160>}, {pipeline_mode = #tpu.pipeline_mode<synchronous>, transform_indices = @transform_5, window_bounds = array<i64: 32, 128>}, {pipeline_mode = #tpu.pipeline_mode<synchronous>, transform_indices = @transform_6, window_bounds = array<i64: 32, 128>}, {pipeline_mode = #tpu.pipeline_mode<synchronous>, transform_indices = @transform_7, window_bounds = array<i64: 32, 128>}, {pipeline_mode = #tpu.pipeline_mode<synchronous>, transform_indices = @transform_8, window_bounds = array<i64: 8, 128>}, {pipeline_mode = #tpu.pipeline_mode<synchronous>, transform_indices = @transform_9, window_bounds = array<i64: 18, 128>}]} {
    %c0 = arith.constant 0 : index
    %c0_0 = arith.constant 0 : index
    %c0_1 = arith.constant 0 : index
    %0 = vector.load %arg2[%c0, %c0_0, %c0_1] : memref<2x8x64xf32, #tpu.memory_space<vmem>>, vector<2x8x64xf32>
    %c0_2 = arith.constant 0 : index
    %c0_3 = arith.constant 0 : index
    %c0_4 = arith.constant 0 : index
    %1 = vector.load %arg3[%c0_2, %c0_3, %c0_4] : memref<2x64x32xf32, #tpu.memory_space<vmem>>, vector<1x64x32xf32>
    %2 = vector.shape_cast %1 : vector<1x64x32xf32> to vector<64x32xf32>
    %c1 = arith.constant 1 : index
    %c0_5 = arith.constant 0 : index
    %c0_6 = arith.constant 0 : index
    %3 = vector.load %arg3[%c1, %c0_5, %c0_6] : memref<2x64x32xf32, #tpu.memory_space<vmem>>, vector<1x64x32xf32>
    %4 = vector.shape_cast %3 : vector<1x64x32xf32> to vector<64x32xf32>
    %c0_7 = arith.constant 0 : index
    %c0_8 = arith.constant 0 : index
    %5 = vector.load %arg4[%c0_7, %c0_8] : memref<32x32xf32, #tpu.memory_space<vmem>>, vector<32x32xf32>
    %c0_9 = arith.constant 0 : index
    %c0_10 = arith.constant 0 : index
    %6 = vector.load %arg5[%c0_9, %c0_10] : memref<32x160xf32, #tpu.memory_space<vmem>>, vector<32x160xf32>
    %c0_11 = arith.constant 0 : index
    %c0_12 = arith.constant 0 : index
    %7 = vector.load %arg6[%c0_11, %c0_12] : memref<32x128xf32, #tpu.memory_space<vmem>>, vector<32x128xf32>
    %c0_13 = arith.constant 0 : index
    %c0_14 = arith.constant 0 : index
    %8 = vector.load %arg7[%c0_13, %c0_14] : memref<32x128xf32, #tpu.memory_space<vmem>>, vector<32x128xf32>
    %c0_15 = arith.constant 0 : index
    %c0_16 = arith.constant 0 : index
    %9 = vector.load %arg8[%c0_15, %c0_16] : memref<32x128xf32, #tpu.memory_space<vmem>>, vector<32x128xf32>
    %c0_17 = arith.constant 0 : index
    %c0_18 = arith.constant 0 : index
    %10 = vector.load %arg9[%c0_17, %c0_18] : memref<8x128xf32, #tpu.memory_space<vmem>>, vector<1x32xf32>
    %c1_19 = arith.constant 1 : index
    %c0_20 = arith.constant 0 : index
    %11 = vector.load %arg9[%c1_19, %c0_20] : memref<8x128xf32, #tpu.memory_space<vmem>>, vector<1x32xf32>
    %c2 = arith.constant 2 : index
    %c0_21 = arith.constant 0 : index
    %12 = vector.load %arg9[%c2, %c0_21] : memref<8x128xf32, #tpu.memory_space<vmem>>, vector<1x32xf32>
    %c3 = arith.constant 3 : index
    %c0_22 = arith.constant 0 : index
    %13 = vector.load %arg9[%c3, %c0_22] : memref<8x128xf32, #tpu.memory_space<vmem>>, vector<1x32xf32>
    %14 = vector.shape_cast %13 : vector<1x32xf32> to vector<1x1x32xf32>
    %c4 = arith.constant 4 : index
    %c0_23 = arith.constant 0 : index
    %15 = vector.load %arg9[%c4, %c0_23] : memref<8x128xf32, #tpu.memory_space<vmem>>, vector<1x128xf32>
    %c5 = arith.constant 5 : index
    %c0_24 = arith.constant 0 : index
    %16 = vector.load %arg9[%c5, %c0_24] : memref<8x128xf32, #tpu.memory_space<vmem>>, vector<1x128xf32>
    %cst = arith.constant dense<0.000000e+00> : vector<2x64xf32>
    %17 = vector.multi_reduction <add>, %0, %cst [1] : vector<2x8x64xf32> to vector<2x64xf32>
    %cst_25 = arith.constant 8.000000e+00 : f32
    %18 = vector.broadcast %cst_25 : f32 to vector<2x64xf32>
    %19 = arith.divf %17, %18 : vector<2x64xf32>
    %cst_26 = arith.constant dense<0.000000e+00> : vector<2x32xf32>
    %20 = tpu.matmul %19, %2, %cst_26 {dimension_numbers = #tpu.dot_dimension_numbers<[1], [0], [0], [1], [0, 0, 1, 1], [], []>} : vector<2x64xf32>, vector<64x32xf32>, vector<2x32xf32> -> vector<2x32xf32>
    %21 = vector.broadcast %10 : vector<1x32xf32> to vector<2x32xf32>
    %22 = arith.addf %20, %21 : vector<2x32xf32>
    %cst_27 = arith.constant 0.000000e+00 : f32
    %23 = vector.broadcast %cst_27 : f32 to vector<2x32xf32>
    %24 = arith.maximumf %22, %23 : vector<2x32xf32>
    %25 = vector.shape_cast %0 : vector<2x8x64xf32> to vector<16x64xf32>
    %cst_28 = arith.constant dense<0.000000e+00> : vector<16x32xf32>
    %26 = tpu.matmul %25, %4, %cst_28 {dimension_numbers = #tpu.dot_dimension_numbers<[1], [0], [0], [1], [0, 0, 1, 1], [], []>} : vector<16x64xf32>, vector<64x32xf32>, vector<16x32xf32> -> vector<16x32xf32>
    %27 = vector.broadcast %11 : vector<1x32xf32> to vector<16x32xf32>
    %28 = arith.addf %26, %27 : vector<16x32xf32>
    %cst_29 = arith.constant 0.000000e+00 : f32
    %29 = vector.broadcast %cst_29 : f32 to vector<16x32xf32>
    %30 = arith.maximumf %28, %29 : vector<16x32xf32>
    %31 = vector.shape_cast %30 : vector<16x32xf32> to vector<2x8x32xf32>
    %cst_30 = arith.constant dense<0.000000e+00> : vector<16x32xf32>
    %32 = tpu.matmul %30, %5, %cst_30 {dimension_numbers = #tpu.dot_dimension_numbers<[1], [0], [0], [1], [0, 0, 1, 1], [], []>} : vector<16x32xf32>, vector<32x32xf32>, vector<16x32xf32> -> vector<16x32xf32>
    %33 = vector.broadcast %12 : vector<1x32xf32> to vector<16x32xf32>
    %34 = arith.addf %32, %33 : vector<16x32xf32>
    %35 = vector.shape_cast %34 : vector<16x32xf32> to vector<2x8x32xf32>
    %c0_31 = arith.constant 0 : index
    %c0_32 = arith.constant 0 : index
    %36 = vector.load %arg1[%c0_31, %c0_32] : memref<18x32xf32, #tpu.memory_space<vmem>>, vector<18x32xf32>
    %37 = tpu.concatenate %24, %24, %24, %24, %24, %24, %24, %24, %24 in 0 : vector<2x32xf32>, vector<2x32xf32>, vector<2x32xf32>, vector<2x32xf32>, vector<2x32xf32>, vector<2x32xf32>, vector<2x32xf32>, vector<2x32xf32>, vector<2x32xf32> -> vector<18x32xf32>
    %38 = arith.addf %36, %37 : vector<18x32xf32>
    %cst_33 = arith.constant dense<0.000000e+00> : vector<18x128xf32>
    %39 = tpu.matmul %38, %8, %cst_33 {dimension_numbers = #tpu.dot_dimension_numbers<[1], [0], [0], [1], [0, 0, 1, 1], [], []>} : vector<18x32xf32>, vector<32x128xf32>, vector<18x128xf32> -> vector<18x128xf32>
    %40 = vector.broadcast %15 : vector<1x128xf32> to vector<18x128xf32>
    %41 = arith.addf %39, %40 : vector<18x128xf32>
    %cst_34 = arith.constant dense<0.000000e+00> : vector<2x160xf32>
    %42 = tpu.matmul %24, %6, %cst_34 {dimension_numbers = #tpu.dot_dimension_numbers<[1], [0], [0], [1], [0, 0, 1, 1], [], []>} : vector<2x32xf32>, vector<32x160xf32>, vector<2x160xf32> -> vector<2x160xf32>
    %43 = vector.extract_strided_slice %42 {offsets = [0, 0], sizes = [2, 128], strides = [1, 1]} : vector<2x160xf32> to vector<2x128xf32>
    %44 = vector.extract_strided_slice %42 {offsets = [0, 128], sizes = [2, 32], strides = [1, 1]} : vector<2x160xf32> to vector<2x32xf32>
    %45 = vector.shape_cast %44 : vector<2x32xf32> to vector<2x1x32xf32>
    %46 = vector.broadcast %45 : vector<2x1x32xf32> to vector<2x8x32xf32>
    %47 = arith.addf %35, %46 : vector<2x8x32xf32>
    %48 = math.tanh %47 : vector<2x8x32xf32>
    %49 = vector.broadcast %14 : vector<1x1x32xf32> to vector<2x8x32xf32>
    %50 = arith.mulf %48, %49 : vector<2x8x32xf32>
    %cst_35 = arith.constant dense<0.000000e+00> : vector<2x8xf32>
    %51 = vector.multi_reduction <add>, %50, %cst_35 [2] : vector<2x8x32xf32> to vector<2x8xf32>
    %52 = math.exp %51 : vector<2x8xf32>
    %cst_36 = arith.constant dense<0.000000e+00> : vector<2xf32>
    %53 = vector.multi_reduction <add>, %52, %cst_36 [1] : vector<2x8xf32> to vector<2xf32>
    %54 = vector.shape_cast %53 : vector<2xf32> to vector<2x1xf32>
    %55 = tpu.reciprocal %54 {approx = true} : vector<2x1xf32> -> vector<2x1xf32>
    %56 = vector.broadcast %55 : vector<2x1xf32> to vector<2x8xf32>
    %57 = arith.mulf %52, %56 : vector<2x8xf32>
    %58 = vector.shape_cast %57 : vector<2x8xf32> to vector<2x8x1xf32>
    %59 = vector.broadcast %58 : vector<2x8x1xf32> to vector<2x8x32xf32>
    %60 = arith.mulf %59, %31 : vector<2x8x32xf32>
    %cst_37 = arith.constant dense<0.000000e+00> : vector<2x32xf32>
    %61 = vector.multi_reduction <add>, %60, %cst_37 [1] : vector<2x8x32xf32> to vector<2x32xf32>
    %cst_38 = arith.constant dense<0.000000e+00> : vector<2x128xf32>
    %62 = tpu.matmul %61, %7, %cst_38 {dimension_numbers = #tpu.dot_dimension_numbers<[1], [0], [0], [1], [0, 0, 1, 1], [], []>} : vector<2x32xf32>, vector<32x128xf32>, vector<2x128xf32> -> vector<2x128xf32>
    %63 = arith.addf %62, %43 : vector<2x128xf32>
    %64 = vector.extract_strided_slice %41 {offsets = [0, 0], sizes = [2, 128], strides = [1, 1]} : vector<18x128xf32> to vector<2x128xf32>
    %65 = arith.addf %63, %64 : vector<2x128xf32>
    %66 = vector.extract_strided_slice %65 {offsets = [0, 0], sizes = [2, 32], strides = [1, 1]} : vector<2x128xf32> to vector<2x32xf32>
    %67 = arith.negf %66 : vector<2x32xf32>
    %68 = math.exp %67 : vector<2x32xf32>
    %cst_39 = arith.constant 1.000000e+00 : f32
    %69 = vector.broadcast %cst_39 : f32 to vector<2x32xf32>
    %70 = arith.addf %69, %68 : vector<2x32xf32>
    %71 = arith.divf %69, %70 : vector<2x32xf32>
    %72 = vector.extract_strided_slice %65 {offsets = [0, 32], sizes = [2, 32], strides = [1, 1]} : vector<2x128xf32> to vector<2x32xf32>
    %73 = arith.negf %72 : vector<2x32xf32>
    %74 = math.exp %73 : vector<2x32xf32>
    %cst_40 = arith.constant 1.000000e+00 : f32
    %75 = vector.broadcast %cst_40 : f32 to vector<2x32xf32>
    %76 = arith.addf %75, %74 : vector<2x32xf32>
    %77 = arith.divf %75, %76 : vector<2x32xf32>
    %78 = vector.extract_strided_slice %65 {offsets = [0, 64], sizes = [2, 32], strides = [1, 1]} : vector<2x128xf32> to vector<2x32xf32>
    %79 = arith.negf %78 : vector<2x32xf32>
    %80 = math.exp %79 : vector<2x32xf32>
    %cst_41 = arith.constant 1.000000e+00 : f32
    %81 = vector.broadcast %cst_41 : f32 to vector<2x32xf32>
    %82 = arith.addf %81, %80 : vector<2x32xf32>
    %83 = arith.divf %81, %82 : vector<2x32xf32>
    %84 = vector.extract_strided_slice %65 {offsets = [0, 96], sizes = [2, 32], strides = [1, 1]} : vector<2x128xf32> to vector<2x32xf32>
    %85 = math.tanh %84 : vector<2x32xf32>
    %86 = arith.mulf %77, %24 : vector<2x32xf32>
    %87 = arith.mulf %71, %85 : vector<2x32xf32>
    %88 = arith.addf %86, %87 : vector<2x32xf32>
    %89 = math.tanh %88 : vector<2x32xf32>
    %90 = arith.mulf %83, %89 : vector<2x32xf32>
    %cst_42 = arith.constant dense<0.000000e+00> : vector<2x160xf32>
    %91 = tpu.matmul %90, %6, %cst_42 {dimension_numbers = #tpu.dot_dimension_numbers<[1], [0], [0], [1], [0, 0, 1, 1], [], []>} : vector<2x32xf32>, vector<32x160xf32>, vector<2x160xf32> -> vector<2x160xf32>
    %92 = vector.extract_strided_slice %91 {offsets = [0, 0], sizes = [2, 128], strides = [1, 1]} : vector<2x160xf32> to vector<2x128xf32>
    %93 = vector.extract_strided_slice %91 {offsets = [0, 128], sizes = [2, 32], strides = [1, 1]} : vector<2x160xf32> to vector<2x32xf32>
    %94 = vector.shape_cast %93 : vector<2x32xf32> to vector<2x1x32xf32>
    %95 = vector.broadcast %94 : vector<2x1x32xf32> to vector<2x8x32xf32>
    %96 = arith.addf %35, %95 : vector<2x8x32xf32>
    %97 = math.tanh %96 : vector<2x8x32xf32>
    %98 = vector.broadcast %14 : vector<1x1x32xf32> to vector<2x8x32xf32>
    %99 = arith.mulf %97, %98 : vector<2x8x32xf32>
    %cst_43 = arith.constant dense<0.000000e+00> : vector<2x8xf32>
    %100 = vector.multi_reduction <add>, %99, %cst_43 [2] : vector<2x8x32xf32> to vector<2x8xf32>
    %101 = math.exp %100 : vector<2x8xf32>
    %cst_44 = arith.constant dense<0.000000e+00> : vector<2xf32>
    %102 = vector.multi_reduction <add>, %101, %cst_44 [1] : vector<2x8xf32> to vector<2xf32>
    %103 = vector.shape_cast %102 : vector<2xf32> to vector<2x1xf32>
    %104 = tpu.reciprocal %103 {approx = true} : vector<2x1xf32> -> vector<2x1xf32>
    %105 = vector.broadcast %104 : vector<2x1xf32> to vector<2x8xf32>
    %106 = arith.mulf %101, %105 : vector<2x8xf32>
    %107 = vector.shape_cast %106 : vector<2x8xf32> to vector<2x8x1xf32>
    %108 = vector.broadcast %107 : vector<2x8x1xf32> to vector<2x8x32xf32>
    %109 = arith.mulf %108, %31 : vector<2x8x32xf32>
    %cst_45 = arith.constant dense<0.000000e+00> : vector<2x32xf32>
    %110 = vector.multi_reduction <add>, %109, %cst_45 [1] : vector<2x8x32xf32> to vector<2x32xf32>
    %cst_46 = arith.constant dense<0.000000e+00> : vector<2x128xf32>
    %111 = tpu.matmul %110, %7, %cst_46 {dimension_numbers = #tpu.dot_dimension_numbers<[1], [0], [0], [1], [0, 0, 1, 1], [], []>} : vector<2x32xf32>, vector<32x128xf32>, vector<2x128xf32> -> vector<2x128xf32>
    %112 = arith.addf %111, %92 : vector<2x128xf32>
    %113 = vector.extract_strided_slice %41 {offsets = [2, 0], sizes = [2, 128], strides = [1, 1]} : vector<18x128xf32> to vector<2x128xf32>
    %114 = arith.addf %112, %113 : vector<2x128xf32>
    %115 = vector.extract_strided_slice %114 {offsets = [0, 0], sizes = [2, 32], strides = [1, 1]} : vector<2x128xf32> to vector<2x32xf32>
    %116 = arith.negf %115 : vector<2x32xf32>
    %117 = math.exp %116 : vector<2x32xf32>
    %cst_47 = arith.constant 1.000000e+00 : f32
    %118 = vector.broadcast %cst_47 : f32 to vector<2x32xf32>
    %119 = arith.addf %118, %117 : vector<2x32xf32>
    %120 = arith.divf %118, %119 : vector<2x32xf32>
    %121 = vector.extract_strided_slice %114 {offsets = [0, 32], sizes = [2, 32], strides = [1, 1]} : vector<2x128xf32> to vector<2x32xf32>
    %122 = arith.negf %121 : vector<2x32xf32>
    %123 = math.exp %122 : vector<2x32xf32>
    %cst_48 = arith.constant 1.000000e+00 : f32
    %124 = vector.broadcast %cst_48 : f32 to vector<2x32xf32>
    %125 = arith.addf %124, %123 : vector<2x32xf32>
    %126 = arith.divf %124, %125 : vector<2x32xf32>
    %127 = vector.extract_strided_slice %114 {offsets = [0, 64], sizes = [2, 32], strides = [1, 1]} : vector<2x128xf32> to vector<2x32xf32>
    %128 = arith.negf %127 : vector<2x32xf32>
    %129 = math.exp %128 : vector<2x32xf32>
    %cst_49 = arith.constant 1.000000e+00 : f32
    %130 = vector.broadcast %cst_49 : f32 to vector<2x32xf32>
    %131 = arith.addf %130, %129 : vector<2x32xf32>
    %132 = arith.divf %130, %131 : vector<2x32xf32>
    %133 = vector.extract_strided_slice %114 {offsets = [0, 96], sizes = [2, 32], strides = [1, 1]} : vector<2x128xf32> to vector<2x32xf32>
    %134 = math.tanh %133 : vector<2x32xf32>
    %135 = arith.mulf %126, %88 : vector<2x32xf32>
    %136 = arith.mulf %120, %134 : vector<2x32xf32>
    %137 = arith.addf %135, %136 : vector<2x32xf32>
    %138 = math.tanh %137 : vector<2x32xf32>
    %139 = arith.mulf %132, %138 : vector<2x32xf32>
    %cst_50 = arith.constant dense<0.000000e+00> : vector<2x160xf32>
    %140 = tpu.matmul %139, %6, %cst_50 {dimension_numbers = #tpu.dot_dimension_numbers<[1], [0], [0], [1], [0, 0, 1, 1], [], []>} : vector<2x32xf32>, vector<32x160xf32>, vector<2x160xf32> -> vector<2x160xf32>
    %141 = vector.extract_strided_slice %140 {offsets = [0, 0], sizes = [2, 128], strides = [1, 1]} : vector<2x160xf32> to vector<2x128xf32>
    %142 = vector.extract_strided_slice %140 {offsets = [0, 128], sizes = [2, 32], strides = [1, 1]} : vector<2x160xf32> to vector<2x32xf32>
    %143 = vector.shape_cast %142 : vector<2x32xf32> to vector<2x1x32xf32>
    %144 = vector.broadcast %143 : vector<2x1x32xf32> to vector<2x8x32xf32>
    %145 = arith.addf %35, %144 : vector<2x8x32xf32>
    %146 = math.tanh %145 : vector<2x8x32xf32>
    %147 = vector.broadcast %14 : vector<1x1x32xf32> to vector<2x8x32xf32>
    %148 = arith.mulf %146, %147 : vector<2x8x32xf32>
    %cst_51 = arith.constant dense<0.000000e+00> : vector<2x8xf32>
    %149 = vector.multi_reduction <add>, %148, %cst_51 [2] : vector<2x8x32xf32> to vector<2x8xf32>
    %150 = math.exp %149 : vector<2x8xf32>
    %cst_52 = arith.constant dense<0.000000e+00> : vector<2xf32>
    %151 = vector.multi_reduction <add>, %150, %cst_52 [1] : vector<2x8xf32> to vector<2xf32>
    %152 = vector.shape_cast %151 : vector<2xf32> to vector<2x1xf32>
    %153 = tpu.reciprocal %152 {approx = true} : vector<2x1xf32> -> vector<2x1xf32>
    %154 = vector.broadcast %153 : vector<2x1xf32> to vector<2x8xf32>
    %155 = arith.mulf %150, %154 : vector<2x8xf32>
    %156 = vector.shape_cast %155 : vector<2x8xf32> to vector<2x8x1xf32>
    %157 = vector.broadcast %156 : vector<2x8x1xf32> to vector<2x8x32xf32>
    %158 = arith.mulf %157, %31 : vector<2x8x32xf32>
    %cst_53 = arith.constant dense<0.000000e+00> : vector<2x32xf32>
    %159 = vector.multi_reduction <add>, %158, %cst_53 [1] : vector<2x8x32xf32> to vector<2x32xf32>
    %cst_54 = arith.constant dense<0.000000e+00> : vector<2x128xf32>
    %160 = tpu.matmul %159, %7, %cst_54 {dimension_numbers = #tpu.dot_dimension_numbers<[1], [0], [0], [1], [0, 0, 1, 1], [], []>} : vector<2x32xf32>, vector<32x128xf32>, vector<2x128xf32> -> vector<2x128xf32>
    %161 = arith.addf %160, %141 : vector<2x128xf32>
    %162 = vector.extract_strided_slice %41 {offsets = [4, 0], sizes = [2, 128], strides = [1, 1]} : vector<18x128xf32> to vector<2x128xf32>
    %163 = arith.addf %161, %162 : vector<2x128xf32>
    %164 = vector.extract_strided_slice %163 {offsets = [0, 0], sizes = [2, 32], strides = [1, 1]} : vector<2x128xf32> to vector<2x32xf32>
    %165 = arith.negf %164 : vector<2x32xf32>
    %166 = math.exp %165 : vector<2x32xf32>
    %cst_55 = arith.constant 1.000000e+00 : f32
    %167 = vector.broadcast %cst_55 : f32 to vector<2x32xf32>
    %168 = arith.addf %167, %166 : vector<2x32xf32>
    %169 = arith.divf %167, %168 : vector<2x32xf32>
    %170 = vector.extract_strided_slice %163 {offsets = [0, 32], sizes = [2, 32], strides = [1, 1]} : vector<2x128xf32> to vector<2x32xf32>
    %171 = arith.negf %170 : vector<2x32xf32>
    %172 = math.exp %171 : vector<2x32xf32>
    %cst_56 = arith.constant 1.000000e+00 : f32
    %173 = vector.broadcast %cst_56 : f32 to vector<2x32xf32>
    %174 = arith.addf %173, %172 : vector<2x32xf32>
    %175 = arith.divf %173, %174 : vector<2x32xf32>
    %176 = vector.extract_strided_slice %163 {offsets = [0, 64], sizes = [2, 32], strides = [1, 1]} : vector<2x128xf32> to vector<2x32xf32>
    %177 = arith.negf %176 : vector<2x32xf32>
    %178 = math.exp %177 : vector<2x32xf32>
    %cst_57 = arith.constant 1.000000e+00 : f32
    %179 = vector.broadcast %cst_57 : f32 to vector<2x32xf32>
    %180 = arith.addf %179, %178 : vector<2x32xf32>
    %181 = arith.divf %179, %180 : vector<2x32xf32>
    %182 = vector.extract_strided_slice %163 {offsets = [0, 96], sizes = [2, 32], strides = [1, 1]} : vector<2x128xf32> to vector<2x32xf32>
    %183 = math.tanh %182 : vector<2x32xf32>
    %184 = arith.mulf %175, %137 : vector<2x32xf32>
    %185 = arith.mulf %169, %183 : vector<2x32xf32>
    %186 = arith.addf %184, %185 : vector<2x32xf32>
    %187 = math.tanh %186 : vector<2x32xf32>
    %188 = arith.mulf %181, %187 : vector<2x32xf32>
    %cst_58 = arith.constant dense<0.000000e+00> : vector<2x160xf32>
    %189 = tpu.matmul %188, %6, %cst_58 {dimension_numbers = #tpu.dot_dimension_numbers<[1], [0], [0], [1], [0, 0, 1, 1], [], []>} : vector<2x32xf32>, vector<32x160xf32>, vector<2x160xf32> -> vector<2x160xf32>
    %190 = vector.extract_strided_slice %189 {offsets = [0, 0], sizes = [2, 128], strides = [1, 1]} : vector<2x160xf32> to vector<2x128xf32>
    %191 = vector.extract_strided_slice %189 {offsets = [0, 128], sizes = [2, 32], strides = [1, 1]} : vector<2x160xf32> to vector<2x32xf32>
    %192 = vector.shape_cast %191 : vector<2x32xf32> to vector<2x1x32xf32>
    %193 = vector.broadcast %192 : vector<2x1x32xf32> to vector<2x8x32xf32>
    %194 = arith.addf %35, %193 : vector<2x8x32xf32>
    %195 = math.tanh %194 : vector<2x8x32xf32>
    %196 = vector.broadcast %14 : vector<1x1x32xf32> to vector<2x8x32xf32>
    %197 = arith.mulf %195, %196 : vector<2x8x32xf32>
    %cst_59 = arith.constant dense<0.000000e+00> : vector<2x8xf32>
    %198 = vector.multi_reduction <add>, %197, %cst_59 [2] : vector<2x8x32xf32> to vector<2x8xf32>
    %199 = math.exp %198 : vector<2x8xf32>
    %cst_60 = arith.constant dense<0.000000e+00> : vector<2xf32>
    %200 = vector.multi_reduction <add>, %199, %cst_60 [1] : vector<2x8xf32> to vector<2xf32>
    %201 = vector.shape_cast %200 : vector<2xf32> to vector<2x1xf32>
    %202 = tpu.reciprocal %201 {approx = true} : vector<2x1xf32> -> vector<2x1xf32>
    %203 = vector.broadcast %202 : vector<2x1xf32> to vector<2x8xf32>
    %204 = arith.mulf %199, %203 : vector<2x8xf32>
    %205 = vector.shape_cast %204 : vector<2x8xf32> to vector<2x8x1xf32>
    %206 = vector.broadcast %205 : vector<2x8x1xf32> to vector<2x8x32xf32>
    %207 = arith.mulf %206, %31 : vector<2x8x32xf32>
    %cst_61 = arith.constant dense<0.000000e+00> : vector<2x32xf32>
    %208 = vector.multi_reduction <add>, %207, %cst_61 [1] : vector<2x8x32xf32> to vector<2x32xf32>
    %cst_62 = arith.constant dense<0.000000e+00> : vector<2x128xf32>
    %209 = tpu.matmul %208, %7, %cst_62 {dimension_numbers = #tpu.dot_dimension_numbers<[1], [0], [0], [1], [0, 0, 1, 1], [], []>} : vector<2x32xf32>, vector<32x128xf32>, vector<2x128xf32> -> vector<2x128xf32>
    %210 = arith.addf %209, %190 : vector<2x128xf32>
    %211 = vector.extract_strided_slice %41 {offsets = [6, 0], sizes = [2, 128], strides = [1, 1]} : vector<18x128xf32> to vector<2x128xf32>
    %212 = arith.addf %210, %211 : vector<2x128xf32>
    %213 = vector.extract_strided_slice %212 {offsets = [0, 0], sizes = [2, 32], strides = [1, 1]} : vector<2x128xf32> to vector<2x32xf32>
    %214 = arith.negf %213 : vector<2x32xf32>
    %215 = math.exp %214 : vector<2x32xf32>
    %cst_63 = arith.constant 1.000000e+00 : f32
    %216 = vector.broadcast %cst_63 : f32 to vector<2x32xf32>
    %217 = arith.addf %216, %215 : vector<2x32xf32>
    %218 = arith.divf %216, %217 : vector<2x32xf32>
    %219 = vector.extract_strided_slice %212 {offsets = [0, 32], sizes = [2, 32], strides = [1, 1]} : vector<2x128xf32> to vector<2x32xf32>
    %220 = arith.negf %219 : vector<2x32xf32>
    %221 = math.exp %220 : vector<2x32xf32>
    %cst_64 = arith.constant 1.000000e+00 : f32
    %222 = vector.broadcast %cst_64 : f32 to vector<2x32xf32>
    %223 = arith.addf %222, %221 : vector<2x32xf32>
    %224 = arith.divf %222, %223 : vector<2x32xf32>
    %225 = vector.extract_strided_slice %212 {offsets = [0, 64], sizes = [2, 32], strides = [1, 1]} : vector<2x128xf32> to vector<2x32xf32>
    %226 = arith.negf %225 : vector<2x32xf32>
    %227 = math.exp %226 : vector<2x32xf32>
    %cst_65 = arith.constant 1.000000e+00 : f32
    %228 = vector.broadcast %cst_65 : f32 to vector<2x32xf32>
    %229 = arith.addf %228, %227 : vector<2x32xf32>
    %230 = arith.divf %228, %229 : vector<2x32xf32>
    %231 = vector.extract_strided_slice %212 {offsets = [0, 96], sizes = [2, 32], strides = [1, 1]} : vector<2x128xf32> to vector<2x32xf32>
    %232 = math.tanh %231 : vector<2x32xf32>
    %233 = arith.mulf %224, %186 : vector<2x32xf32>
    %234 = arith.mulf %218, %232 : vector<2x32xf32>
    %235 = arith.addf %233, %234 : vector<2x32xf32>
    %236 = math.tanh %235 : vector<2x32xf32>
    %237 = arith.mulf %230, %236 : vector<2x32xf32>
    %cst_66 = arith.constant dense<0.000000e+00> : vector<2x160xf32>
    %238 = tpu.matmul %237, %6, %cst_66 {dimension_numbers = #tpu.dot_dimension_numbers<[1], [0], [0], [1], [0, 0, 1, 1], [], []>} : vector<2x32xf32>, vector<32x160xf32>, vector<2x160xf32> -> vector<2x160xf32>
    %239 = vector.extract_strided_slice %238 {offsets = [0, 0], sizes = [2, 128], strides = [1, 1]} : vector<2x160xf32> to vector<2x128xf32>
    %240 = vector.extract_strided_slice %238 {offsets = [0, 128], sizes = [2, 32], strides = [1, 1]} : vector<2x160xf32> to vector<2x32xf32>
    %241 = vector.shape_cast %240 : vector<2x32xf32> to vector<2x1x32xf32>
    %242 = vector.broadcast %241 : vector<2x1x32xf32> to vector<2x8x32xf32>
    %243 = arith.addf %35, %242 : vector<2x8x32xf32>
    %244 = math.tanh %243 : vector<2x8x32xf32>
    %245 = vector.broadcast %14 : vector<1x1x32xf32> to vector<2x8x32xf32>
    %246 = arith.mulf %244, %245 : vector<2x8x32xf32>
    %cst_67 = arith.constant dense<0.000000e+00> : vector<2x8xf32>
    %247 = vector.multi_reduction <add>, %246, %cst_67 [2] : vector<2x8x32xf32> to vector<2x8xf32>
    %248 = math.exp %247 : vector<2x8xf32>
    %cst_68 = arith.constant dense<0.000000e+00> : vector<2xf32>
    %249 = vector.multi_reduction <add>, %248, %cst_68 [1] : vector<2x8xf32> to vector<2xf32>
    %250 = vector.shape_cast %249 : vector<2xf32> to vector<2x1xf32>
    %251 = tpu.reciprocal %250 {approx = true} : vector<2x1xf32> -> vector<2x1xf32>
    %252 = vector.broadcast %251 : vector<2x1xf32> to vector<2x8xf32>
    %253 = arith.mulf %248, %252 : vector<2x8xf32>
    %254 = vector.shape_cast %253 : vector<2x8xf32> to vector<2x8x1xf32>
    %255 = vector.broadcast %254 : vector<2x8x1xf32> to vector<2x8x32xf32>
    %256 = arith.mulf %255, %31 : vector<2x8x32xf32>
    %cst_69 = arith.constant dense<0.000000e+00> : vector<2x32xf32>
    %257 = vector.multi_reduction <add>, %256, %cst_69 [1] : vector<2x8x32xf32> to vector<2x32xf32>
    %cst_70 = arith.constant dense<0.000000e+00> : vector<2x128xf32>
    %258 = tpu.matmul %257, %7, %cst_70 {dimension_numbers = #tpu.dot_dimension_numbers<[1], [0], [0], [1], [0, 0, 1, 1], [], []>} : vector<2x32xf32>, vector<32x128xf32>, vector<2x128xf32> -> vector<2x128xf32>
    %259 = arith.addf %258, %239 : vector<2x128xf32>
    %260 = vector.extract_strided_slice %41 {offsets = [8, 0], sizes = [2, 128], strides = [1, 1]} : vector<18x128xf32> to vector<2x128xf32>
    %261 = arith.addf %259, %260 : vector<2x128xf32>
    %262 = vector.extract_strided_slice %261 {offsets = [0, 0], sizes = [2, 32], strides = [1, 1]} : vector<2x128xf32> to vector<2x32xf32>
    %263 = arith.negf %262 : vector<2x32xf32>
    %264 = math.exp %263 : vector<2x32xf32>
    %cst_71 = arith.constant 1.000000e+00 : f32
    %265 = vector.broadcast %cst_71 : f32 to vector<2x32xf32>
    %266 = arith.addf %265, %264 : vector<2x32xf32>
    %267 = arith.divf %265, %266 : vector<2x32xf32>
    %268 = vector.extract_strided_slice %261 {offsets = [0, 32], sizes = [2, 32], strides = [1, 1]} : vector<2x128xf32> to vector<2x32xf32>
    %269 = arith.negf %268 : vector<2x32xf32>
    %270 = math.exp %269 : vector<2x32xf32>
    %cst_72 = arith.constant 1.000000e+00 : f32
    %271 = vector.broadcast %cst_72 : f32 to vector<2x32xf32>
    %272 = arith.addf %271, %270 : vector<2x32xf32>
    %273 = arith.divf %271, %272 : vector<2x32xf32>
    %274 = vector.extract_strided_slice %261 {offsets = [0, 64], sizes = [2, 32], strides = [1, 1]} : vector<2x128xf32> to vector<2x32xf32>
    %275 = arith.negf %274 : vector<2x32xf32>
    %276 = math.exp %275 : vector<2x32xf32>
    %cst_73 = arith.constant 1.000000e+00 : f32
    %277 = vector.broadcast %cst_73 : f32 to vector<2x32xf32>
    %278 = arith.addf %277, %276 : vector<2x32xf32>
    %279 = arith.divf %277, %278 : vector<2x32xf32>
    %280 = vector.extract_strided_slice %261 {offsets = [0, 96], sizes = [2, 32], strides = [1, 1]} : vector<2x128xf32> to vector<2x32xf32>
    %281 = math.tanh %280 : vector<2x32xf32>
    %282 = arith.mulf %273, %235 : vector<2x32xf32>
    %283 = arith.mulf %267, %281 : vector<2x32xf32>
    %284 = arith.addf %282, %283 : vector<2x32xf32>
    %285 = math.tanh %284 : vector<2x32xf32>
    %286 = arith.mulf %279, %285 : vector<2x32xf32>
    %cst_74 = arith.constant dense<0.000000e+00> : vector<2x160xf32>
    %287 = tpu.matmul %286, %6, %cst_74 {dimension_numbers = #tpu.dot_dimension_numbers<[1], [0], [0], [1], [0, 0, 1, 1], [], []>} : vector<2x32xf32>, vector<32x160xf32>, vector<2x160xf32> -> vector<2x160xf32>
    %288 = vector.extract_strided_slice %287 {offsets = [0, 0], sizes = [2, 128], strides = [1, 1]} : vector<2x160xf32> to vector<2x128xf32>
    %289 = vector.extract_strided_slice %287 {offsets = [0, 128], sizes = [2, 32], strides = [1, 1]} : vector<2x160xf32> to vector<2x32xf32>
    %290 = vector.shape_cast %289 : vector<2x32xf32> to vector<2x1x32xf32>
    %291 = vector.broadcast %290 : vector<2x1x32xf32> to vector<2x8x32xf32>
    %292 = arith.addf %35, %291 : vector<2x8x32xf32>
    %293 = math.tanh %292 : vector<2x8x32xf32>
    %294 = vector.broadcast %14 : vector<1x1x32xf32> to vector<2x8x32xf32>
    %295 = arith.mulf %293, %294 : vector<2x8x32xf32>
    %cst_75 = arith.constant dense<0.000000e+00> : vector<2x8xf32>
    %296 = vector.multi_reduction <add>, %295, %cst_75 [2] : vector<2x8x32xf32> to vector<2x8xf32>
    %297 = math.exp %296 : vector<2x8xf32>
    %cst_76 = arith.constant dense<0.000000e+00> : vector<2xf32>
    %298 = vector.multi_reduction <add>, %297, %cst_76 [1] : vector<2x8xf32> to vector<2xf32>
    %299 = vector.shape_cast %298 : vector<2xf32> to vector<2x1xf32>
    %300 = tpu.reciprocal %299 {approx = true} : vector<2x1xf32> -> vector<2x1xf32>
    %301 = vector.broadcast %300 : vector<2x1xf32> to vector<2x8xf32>
    %302 = arith.mulf %297, %301 : vector<2x8xf32>
    %303 = vector.shape_cast %302 : vector<2x8xf32> to vector<2x8x1xf32>
    %304 = vector.broadcast %303 : vector<2x8x1xf32> to vector<2x8x32xf32>
    %305 = arith.mulf %304, %31 : vector<2x8x32xf32>
    %cst_77 = arith.constant dense<0.000000e+00> : vector<2x32xf32>
    %306 = vector.multi_reduction <add>, %305, %cst_77 [1] : vector<2x8x32xf32> to vector<2x32xf32>
    %cst_78 = arith.constant dense<0.000000e+00> : vector<2x128xf32>
    %307 = tpu.matmul %306, %7, %cst_78 {dimension_numbers = #tpu.dot_dimension_numbers<[1], [0], [0], [1], [0, 0, 1, 1], [], []>} : vector<2x32xf32>, vector<32x128xf32>, vector<2x128xf32> -> vector<2x128xf32>
    %308 = arith.addf %307, %288 : vector<2x128xf32>
    %309 = vector.extract_strided_slice %41 {offsets = [10, 0], sizes = [2, 128], strides = [1, 1]} : vector<18x128xf32> to vector<2x128xf32>
    %310 = arith.addf %308, %309 : vector<2x128xf32>
    %311 = vector.extract_strided_slice %310 {offsets = [0, 0], sizes = [2, 32], strides = [1, 1]} : vector<2x128xf32> to vector<2x32xf32>
    %312 = arith.negf %311 : vector<2x32xf32>
    %313 = math.exp %312 : vector<2x32xf32>
    %cst_79 = arith.constant 1.000000e+00 : f32
    %314 = vector.broadcast %cst_79 : f32 to vector<2x32xf32>
    %315 = arith.addf %314, %313 : vector<2x32xf32>
    %316 = arith.divf %314, %315 : vector<2x32xf32>
    %317 = vector.extract_strided_slice %310 {offsets = [0, 32], sizes = [2, 32], strides = [1, 1]} : vector<2x128xf32> to vector<2x32xf32>
    %318 = arith.negf %317 : vector<2x32xf32>
    %319 = math.exp %318 : vector<2x32xf32>
    %cst_80 = arith.constant 1.000000e+00 : f32
    %320 = vector.broadcast %cst_80 : f32 to vector<2x32xf32>
    %321 = arith.addf %320, %319 : vector<2x32xf32>
    %322 = arith.divf %320, %321 : vector<2x32xf32>
    %323 = vector.extract_strided_slice %310 {offsets = [0, 64], sizes = [2, 32], strides = [1, 1]} : vector<2x128xf32> to vector<2x32xf32>
    %324 = arith.negf %323 : vector<2x32xf32>
    %325 = math.exp %324 : vector<2x32xf32>
    %cst_81 = arith.constant 1.000000e+00 : f32
    %326 = vector.broadcast %cst_81 : f32 to vector<2x32xf32>
    %327 = arith.addf %326, %325 : vector<2x32xf32>
    %328 = arith.divf %326, %327 : vector<2x32xf32>
    %329 = vector.extract_strided_slice %310 {offsets = [0, 96], sizes = [2, 32], strides = [1, 1]} : vector<2x128xf32> to vector<2x32xf32>
    %330 = math.tanh %329 : vector<2x32xf32>
    %331 = arith.mulf %322, %284 : vector<2x32xf32>
    %332 = arith.mulf %316, %330 : vector<2x32xf32>
    %333 = arith.addf %331, %332 : vector<2x32xf32>
    %334 = math.tanh %333 : vector<2x32xf32>
    %335 = arith.mulf %328, %334 : vector<2x32xf32>
    %cst_82 = arith.constant dense<0.000000e+00> : vector<2x160xf32>
    %336 = tpu.matmul %335, %6, %cst_82 {dimension_numbers = #tpu.dot_dimension_numbers<[1], [0], [0], [1], [0, 0, 1, 1], [], []>} : vector<2x32xf32>, vector<32x160xf32>, vector<2x160xf32> -> vector<2x160xf32>
    %337 = vector.extract_strided_slice %336 {offsets = [0, 0], sizes = [2, 128], strides = [1, 1]} : vector<2x160xf32> to vector<2x128xf32>
    %338 = vector.extract_strided_slice %336 {offsets = [0, 128], sizes = [2, 32], strides = [1, 1]} : vector<2x160xf32> to vector<2x32xf32>
    %339 = vector.shape_cast %338 : vector<2x32xf32> to vector<2x1x32xf32>
    %340 = vector.broadcast %339 : vector<2x1x32xf32> to vector<2x8x32xf32>
    %341 = arith.addf %35, %340 : vector<2x8x32xf32>
    %342 = math.tanh %341 : vector<2x8x32xf32>
    %343 = vector.broadcast %14 : vector<1x1x32xf32> to vector<2x8x32xf32>
    %344 = arith.mulf %342, %343 : vector<2x8x32xf32>
    %cst_83 = arith.constant dense<0.000000e+00> : vector<2x8xf32>
    %345 = vector.multi_reduction <add>, %344, %cst_83 [2] : vector<2x8x32xf32> to vector<2x8xf32>
    %346 = math.exp %345 : vector<2x8xf32>
    %cst_84 = arith.constant dense<0.000000e+00> : vector<2xf32>
    %347 = vector.multi_reduction <add>, %346, %cst_84 [1] : vector<2x8xf32> to vector<2xf32>
    %348 = vector.shape_cast %347 : vector<2xf32> to vector<2x1xf32>
    %349 = tpu.reciprocal %348 {approx = true} : vector<2x1xf32> -> vector<2x1xf32>
    %350 = vector.broadcast %349 : vector<2x1xf32> to vector<2x8xf32>
    %351 = arith.mulf %346, %350 : vector<2x8xf32>
    %352 = vector.shape_cast %351 : vector<2x8xf32> to vector<2x8x1xf32>
    %353 = vector.broadcast %352 : vector<2x8x1xf32> to vector<2x8x32xf32>
    %354 = arith.mulf %353, %31 : vector<2x8x32xf32>
    %cst_85 = arith.constant dense<0.000000e+00> : vector<2x32xf32>
    %355 = vector.multi_reduction <add>, %354, %cst_85 [1] : vector<2x8x32xf32> to vector<2x32xf32>
    %cst_86 = arith.constant dense<0.000000e+00> : vector<2x128xf32>
    %356 = tpu.matmul %355, %7, %cst_86 {dimension_numbers = #tpu.dot_dimension_numbers<[1], [0], [0], [1], [0, 0, 1, 1], [], []>} : vector<2x32xf32>, vector<32x128xf32>, vector<2x128xf32> -> vector<2x128xf32>
    %357 = arith.addf %356, %337 : vector<2x128xf32>
    %358 = vector.extract_strided_slice %41 {offsets = [12, 0], sizes = [2, 128], strides = [1, 1]} : vector<18x128xf32> to vector<2x128xf32>
    %359 = arith.addf %357, %358 : vector<2x128xf32>
    %360 = vector.extract_strided_slice %359 {offsets = [0, 0], sizes = [2, 32], strides = [1, 1]} : vector<2x128xf32> to vector<2x32xf32>
    %361 = arith.negf %360 : vector<2x32xf32>
    %362 = math.exp %361 : vector<2x32xf32>
    %cst_87 = arith.constant 1.000000e+00 : f32
    %363 = vector.broadcast %cst_87 : f32 to vector<2x32xf32>
    %364 = arith.addf %363, %362 : vector<2x32xf32>
    %365 = arith.divf %363, %364 : vector<2x32xf32>
    %366 = vector.extract_strided_slice %359 {offsets = [0, 32], sizes = [2, 32], strides = [1, 1]} : vector<2x128xf32> to vector<2x32xf32>
    %367 = arith.negf %366 : vector<2x32xf32>
    %368 = math.exp %367 : vector<2x32xf32>
    %cst_88 = arith.constant 1.000000e+00 : f32
    %369 = vector.broadcast %cst_88 : f32 to vector<2x32xf32>
    %370 = arith.addf %369, %368 : vector<2x32xf32>
    %371 = arith.divf %369, %370 : vector<2x32xf32>
    %372 = vector.extract_strided_slice %359 {offsets = [0, 64], sizes = [2, 32], strides = [1, 1]} : vector<2x128xf32> to vector<2x32xf32>
    %373 = arith.negf %372 : vector<2x32xf32>
    %374 = math.exp %373 : vector<2x32xf32>
    %cst_89 = arith.constant 1.000000e+00 : f32
    %375 = vector.broadcast %cst_89 : f32 to vector<2x32xf32>
    %376 = arith.addf %375, %374 : vector<2x32xf32>
    %377 = arith.divf %375, %376 : vector<2x32xf32>
    %378 = vector.extract_strided_slice %359 {offsets = [0, 96], sizes = [2, 32], strides = [1, 1]} : vector<2x128xf32> to vector<2x32xf32>
    %379 = math.tanh %378 : vector<2x32xf32>
    %380 = arith.mulf %371, %333 : vector<2x32xf32>
    %381 = arith.mulf %365, %379 : vector<2x32xf32>
    %382 = arith.addf %380, %381 : vector<2x32xf32>
    %383 = math.tanh %382 : vector<2x32xf32>
    %384 = arith.mulf %377, %383 : vector<2x32xf32>
    %cst_90 = arith.constant dense<0.000000e+00> : vector<2x160xf32>
    %385 = tpu.matmul %384, %6, %cst_90 {dimension_numbers = #tpu.dot_dimension_numbers<[1], [0], [0], [1], [0, 0, 1, 1], [], []>} : vector<2x32xf32>, vector<32x160xf32>, vector<2x160xf32> -> vector<2x160xf32>
    %386 = vector.extract_strided_slice %385 {offsets = [0, 0], sizes = [2, 128], strides = [1, 1]} : vector<2x160xf32> to vector<2x128xf32>
    %387 = vector.extract_strided_slice %385 {offsets = [0, 128], sizes = [2, 32], strides = [1, 1]} : vector<2x160xf32> to vector<2x32xf32>
    %388 = vector.shape_cast %387 : vector<2x32xf32> to vector<2x1x32xf32>
    %389 = vector.broadcast %388 : vector<2x1x32xf32> to vector<2x8x32xf32>
    %390 = arith.addf %35, %389 : vector<2x8x32xf32>
    %391 = math.tanh %390 : vector<2x8x32xf32>
    %392 = vector.broadcast %14 : vector<1x1x32xf32> to vector<2x8x32xf32>
    %393 = arith.mulf %391, %392 : vector<2x8x32xf32>
    %cst_91 = arith.constant dense<0.000000e+00> : vector<2x8xf32>
    %394 = vector.multi_reduction <add>, %393, %cst_91 [2] : vector<2x8x32xf32> to vector<2x8xf32>
    %395 = math.exp %394 : vector<2x8xf32>
    %cst_92 = arith.constant dense<0.000000e+00> : vector<2xf32>
    %396 = vector.multi_reduction <add>, %395, %cst_92 [1] : vector<2x8xf32> to vector<2xf32>
    %397 = vector.shape_cast %396 : vector<2xf32> to vector<2x1xf32>
    %398 = tpu.reciprocal %397 {approx = true} : vector<2x1xf32> -> vector<2x1xf32>
    %399 = vector.broadcast %398 : vector<2x1xf32> to vector<2x8xf32>
    %400 = arith.mulf %395, %399 : vector<2x8xf32>
    %401 = vector.shape_cast %400 : vector<2x8xf32> to vector<2x8x1xf32>
    %402 = vector.broadcast %401 : vector<2x8x1xf32> to vector<2x8x32xf32>
    %403 = arith.mulf %402, %31 : vector<2x8x32xf32>
    %cst_93 = arith.constant dense<0.000000e+00> : vector<2x32xf32>
    %404 = vector.multi_reduction <add>, %403, %cst_93 [1] : vector<2x8x32xf32> to vector<2x32xf32>
    %cst_94 = arith.constant dense<0.000000e+00> : vector<2x128xf32>
    %405 = tpu.matmul %404, %7, %cst_94 {dimension_numbers = #tpu.dot_dimension_numbers<[1], [0], [0], [1], [0, 0, 1, 1], [], []>} : vector<2x32xf32>, vector<32x128xf32>, vector<2x128xf32> -> vector<2x128xf32>
    %406 = arith.addf %405, %386 : vector<2x128xf32>
    %407 = vector.extract_strided_slice %41 {offsets = [14, 0], sizes = [2, 128], strides = [1, 1]} : vector<18x128xf32> to vector<2x128xf32>
    %408 = arith.addf %406, %407 : vector<2x128xf32>
    %409 = vector.extract_strided_slice %408 {offsets = [0, 0], sizes = [2, 32], strides = [1, 1]} : vector<2x128xf32> to vector<2x32xf32>
    %410 = arith.negf %409 : vector<2x32xf32>
    %411 = math.exp %410 : vector<2x32xf32>
    %cst_95 = arith.constant 1.000000e+00 : f32
    %412 = vector.broadcast %cst_95 : f32 to vector<2x32xf32>
    %413 = arith.addf %412, %411 : vector<2x32xf32>
    %414 = arith.divf %412, %413 : vector<2x32xf32>
    %415 = vector.extract_strided_slice %408 {offsets = [0, 32], sizes = [2, 32], strides = [1, 1]} : vector<2x128xf32> to vector<2x32xf32>
    %416 = arith.negf %415 : vector<2x32xf32>
    %417 = math.exp %416 : vector<2x32xf32>
    %cst_96 = arith.constant 1.000000e+00 : f32
    %418 = vector.broadcast %cst_96 : f32 to vector<2x32xf32>
    %419 = arith.addf %418, %417 : vector<2x32xf32>
    %420 = arith.divf %418, %419 : vector<2x32xf32>
    %421 = vector.extract_strided_slice %408 {offsets = [0, 64], sizes = [2, 32], strides = [1, 1]} : vector<2x128xf32> to vector<2x32xf32>
    %422 = arith.negf %421 : vector<2x32xf32>
    %423 = math.exp %422 : vector<2x32xf32>
    %cst_97 = arith.constant 1.000000e+00 : f32
    %424 = vector.broadcast %cst_97 : f32 to vector<2x32xf32>
    %425 = arith.addf %424, %423 : vector<2x32xf32>
    %426 = arith.divf %424, %425 : vector<2x32xf32>
    %427 = vector.extract_strided_slice %408 {offsets = [0, 96], sizes = [2, 32], strides = [1, 1]} : vector<2x128xf32> to vector<2x32xf32>
    %428 = math.tanh %427 : vector<2x32xf32>
    %429 = arith.mulf %420, %382 : vector<2x32xf32>
    %430 = arith.mulf %414, %428 : vector<2x32xf32>
    %431 = arith.addf %429, %430 : vector<2x32xf32>
    %432 = math.tanh %431 : vector<2x32xf32>
    %433 = arith.mulf %426, %432 : vector<2x32xf32>
    %cst_98 = arith.constant dense<0.000000e+00> : vector<2x160xf32>
    %434 = tpu.matmul %433, %6, %cst_98 {dimension_numbers = #tpu.dot_dimension_numbers<[1], [0], [0], [1], [0, 0, 1, 1], [], []>} : vector<2x32xf32>, vector<32x160xf32>, vector<2x160xf32> -> vector<2x160xf32>
    %435 = vector.extract_strided_slice %434 {offsets = [0, 0], sizes = [2, 128], strides = [1, 1]} : vector<2x160xf32> to vector<2x128xf32>
    %436 = vector.extract_strided_slice %434 {offsets = [0, 128], sizes = [2, 32], strides = [1, 1]} : vector<2x160xf32> to vector<2x32xf32>
    %437 = vector.shape_cast %436 : vector<2x32xf32> to vector<2x1x32xf32>
    %438 = vector.broadcast %437 : vector<2x1x32xf32> to vector<2x8x32xf32>
    %439 = arith.addf %35, %438 : vector<2x8x32xf32>
    %440 = math.tanh %439 : vector<2x8x32xf32>
    %441 = vector.broadcast %14 : vector<1x1x32xf32> to vector<2x8x32xf32>
    %442 = arith.mulf %440, %441 : vector<2x8x32xf32>
    %cst_99 = arith.constant dense<0.000000e+00> : vector<2x8xf32>
    %443 = vector.multi_reduction <add>, %442, %cst_99 [2] : vector<2x8x32xf32> to vector<2x8xf32>
    %444 = math.exp %443 : vector<2x8xf32>
    %cst_100 = arith.constant dense<0.000000e+00> : vector<2xf32>
    %445 = vector.multi_reduction <add>, %444, %cst_100 [1] : vector<2x8xf32> to vector<2xf32>
    %446 = vector.shape_cast %445 : vector<2xf32> to vector<2x1xf32>
    %447 = tpu.reciprocal %446 {approx = true} : vector<2x1xf32> -> vector<2x1xf32>
    %448 = vector.broadcast %447 : vector<2x1xf32> to vector<2x8xf32>
    %449 = arith.mulf %444, %448 : vector<2x8xf32>
    %450 = vector.shape_cast %449 : vector<2x8xf32> to vector<2x8x1xf32>
    %451 = vector.broadcast %450 : vector<2x8x1xf32> to vector<2x8x32xf32>
    %452 = arith.mulf %451, %31 : vector<2x8x32xf32>
    %cst_101 = arith.constant dense<0.000000e+00> : vector<2x32xf32>
    %453 = vector.multi_reduction <add>, %452, %cst_101 [1] : vector<2x8x32xf32> to vector<2x32xf32>
    %cst_102 = arith.constant dense<0.000000e+00> : vector<2x128xf32>
    %454 = tpu.matmul %453, %7, %cst_102 {dimension_numbers = #tpu.dot_dimension_numbers<[1], [0], [0], [1], [0, 0, 1, 1], [], []>} : vector<2x32xf32>, vector<32x128xf32>, vector<2x128xf32> -> vector<2x128xf32>
    %455 = arith.addf %454, %435 : vector<2x128xf32>
    %456 = vector.extract_strided_slice %41 {offsets = [16, 0], sizes = [2, 128], strides = [1, 1]} : vector<18x128xf32> to vector<2x128xf32>
    %457 = arith.addf %455, %456 : vector<2x128xf32>
    %458 = vector.extract_strided_slice %457 {offsets = [0, 0], sizes = [2, 32], strides = [1, 1]} : vector<2x128xf32> to vector<2x32xf32>
    %459 = arith.negf %458 : vector<2x32xf32>
    %460 = math.exp %459 : vector<2x32xf32>
    %cst_103 = arith.constant 1.000000e+00 : f32
    %461 = vector.broadcast %cst_103 : f32 to vector<2x32xf32>
    %462 = arith.addf %461, %460 : vector<2x32xf32>
    %463 = arith.divf %461, %462 : vector<2x32xf32>
    %464 = vector.extract_strided_slice %457 {offsets = [0, 32], sizes = [2, 32], strides = [1, 1]} : vector<2x128xf32> to vector<2x32xf32>
    %465 = arith.negf %464 : vector<2x32xf32>
    %466 = math.exp %465 : vector<2x32xf32>
    %cst_104 = arith.constant 1.000000e+00 : f32
    %467 = vector.broadcast %cst_104 : f32 to vector<2x32xf32>
    %468 = arith.addf %467, %466 : vector<2x32xf32>
    %469 = arith.divf %467, %468 : vector<2x32xf32>
    %470 = vector.extract_strided_slice %457 {offsets = [0, 64], sizes = [2, 32], strides = [1, 1]} : vector<2x128xf32> to vector<2x32xf32>
    %471 = arith.negf %470 : vector<2x32xf32>
    %472 = math.exp %471 : vector<2x32xf32>
    %cst_105 = arith.constant 1.000000e+00 : f32
    %473 = vector.broadcast %cst_105 : f32 to vector<2x32xf32>
    %474 = arith.addf %473, %472 : vector<2x32xf32>
    %475 = arith.divf %473, %474 : vector<2x32xf32>
    %476 = vector.extract_strided_slice %457 {offsets = [0, 96], sizes = [2, 32], strides = [1, 1]} : vector<2x128xf32> to vector<2x32xf32>
    %477 = math.tanh %476 : vector<2x32xf32>
    %478 = arith.mulf %469, %431 : vector<2x32xf32>
    %479 = arith.mulf %463, %477 : vector<2x32xf32>
    %480 = arith.addf %478, %479 : vector<2x32xf32>
    %481 = math.tanh %480 : vector<2x32xf32>
    %482 = arith.mulf %475, %481 : vector<2x32xf32>
    %483 = tpu.concatenate %90, %139, %188, %237, %286, %335, %384, %433, %482 in 0 : vector<2x32xf32>, vector<2x32xf32>, vector<2x32xf32>, vector<2x32xf32>, vector<2x32xf32>, vector<2x32xf32>, vector<2x32xf32>, vector<2x32xf32>, vector<2x32xf32> -> vector<18x32xf32>
    %cst_106 = arith.constant dense<0.000000e+00> : vector<18x128xf32>
    %484 = tpu.matmul %483, %9, %cst_106 {dimension_numbers = #tpu.dot_dimension_numbers<[1], [0], [0], [1], [0, 0, 1, 1], [], []>} : vector<18x32xf32>, vector<32x128xf32>, vector<18x128xf32> -> vector<18x128xf32>
    %485 = vector.broadcast %16 : vector<1x128xf32> to vector<18x128xf32>
    %486 = arith.addf %484, %485 : vector<18x128xf32>
    %cst_107 = arith.constant dense<0xFF800000> : vector<18xf32>
    %487 = vector.multi_reduction <maximumf>, %486, %cst_107 [1] : vector<18x128xf32> to vector<18xf32>
    %488 = vector.shape_cast %487 : vector<18xf32> to vector<18x1xf32>
    %489 = vector.broadcast %488 : vector<18x1xf32> to vector<18x128xf32>
    %490 = arith.subf %486, %489 : vector<18x128xf32>
    %491 = math.exp %490 : vector<18x128xf32>
    %cst_108 = arith.constant dense<0.000000e+00> : vector<18xf32>
    %492 = vector.multi_reduction <add>, %491, %cst_108 [1] : vector<18x128xf32> to vector<18xf32>
    %493 = vector.shape_cast %492 : vector<18xf32> to vector<18x1xf32>
    %494 = math.log %493 : vector<18x1xf32>
    %495 = arith.addf %494, %488 : vector<18x1xf32>
    %496 = vector.broadcast %495 : vector<18x1xf32> to vector<18x128xf32>
    %497 = arith.subf %486, %496 : vector<18x128xf32>
    %c0_109 = arith.constant 0 : index
    %c0_110 = arith.constant 0 : index
    %498 = vector.load %arg10[%c0_109, %c0_110] : memref<18x128xf32, #tpu.memory_space<vmem>>, vector<18x128xf32>
    tpu.vector_store %arg10[%c0_109, %c0_110], %497 {strides = array<i32>} : memref<18x128xf32, #tpu.memory_space<vmem>>, vector<18x128xf32>,
    return
  }
  func.func @transform_0(%arg0: i32) -> (i32, i32) {
    %c0_i32 = arith.constant 0 : i32
    %c0_i32_0 = arith.constant 0 : i32
    %c0_i32_1 = arith.constant 0 : i32
    return %c0_i32, %c0_i32_0 : i32, i32
  }
  func.func @transform_1(%arg0: i32) -> (i32, i32, i32) {
    %c0_i32 = arith.constant 0 : i32
    %c0_i32_0 = arith.constant 0 : i32
    %c0_i32_1 = arith.constant 0 : i32
    %c0_i32_2 = arith.constant 0 : i32
    return %c0_i32, %c0_i32_0, %c0_i32_1 : i32, i32, i32
  }
  func.func @transform_2(%arg0: i32) -> (i32, i32, i32) {
    %c0_i32 = arith.constant 0 : i32
    %c0_i32_0 = arith.constant 0 : i32
    %c0_i32_1 = arith.constant 0 : i32
    %c0_i32_2 = arith.constant 0 : i32
    return %c0_i32, %c0_i32_0, %c0_i32_1 : i32, i32, i32
  }
  func.func @transform_3(%arg0: i32) -> (i32, i32) {
    %c0_i32 = arith.constant 0 : i32
    %c0_i32_0 = arith.constant 0 : i32
    %c0_i32_1 = arith.constant 0 : i32
    return %c0_i32, %c0_i32_0 : i32, i32
  }
  func.func @transform_4(%arg0: i32) -> (i32, i32) {
    %c0_i32 = arith.constant 0 : i32
    %c0_i32_0 = arith.constant 0 : i32
    %c0_i32_1 = arith.constant 0 : i32
    return %c0_i32, %c0_i32_0 : i32, i32
  }
  func.func @transform_5(%arg0: i32) -> (i32, i32) {
    %c0_i32 = arith.constant 0 : i32
    %c0_i32_0 = arith.constant 0 : i32
    %c0_i32_1 = arith.constant 0 : i32
    return %c0_i32, %c0_i32_0 : i32, i32
  }
  func.func @transform_6(%arg0: i32) -> (i32, i32) {
    %c0_i32 = arith.constant 0 : i32
    %c0_i32_0 = arith.constant 0 : i32
    %c0_i32_1 = arith.constant 0 : i32
    return %c0_i32, %c0_i32_0 : i32, i32
  }
  func.func @transform_7(%arg0: i32) -> (i32, i32) {
    %c0_i32 = arith.constant 0 : i32
    %c0_i32_0 = arith.constant 0 : i32
    %c0_i32_1 = arith.constant 0 : i32
    return %c0_i32, %c0_i32_0 : i32, i32
  }
  func.func @transform_8(%arg0: i32) -> (i32, i32) {
    %c0_i32 = arith.constant 0 : i32
    %c0_i32_0 = arith.constant 0 : i32
    %c0_i32_1 = arith.constant 0 : i32
    return %c0_i32, %c0_i32_0 : i32, i32
  }
  func.func @transform_9(%arg0: i32) -> (i32, i32) {
    %c0_i32 = arith.constant 0 : i32
    %c0_i32_0 = arith.constant 0 : i32
    %c0_i32_1 = arith.constant 0 : i32
    return %c0_i32, %c0_i32_0 : i32, i32
  }
}

</mosaic_0001>

<bundles_post_ra>
// kernel: tpu_custom_call.1
= control target key start
LH: loop header
LB: loop body
LE: loop exit
PB: predicated region body
PF: predicated region fallthrough
CT: control target
= control target key end

     0   :  { %14 = vsyncpa [#allocation3], 0  ;;  %s4763_s0 = inlined_call_operand.hbm [shape: f32[18,32], index: 0, kind: input, shape index: {}]   ;;  %s4764_s1 = inlined_call_operand.hbm [shape: f32[2,8,64], index: 1, kind: input, shape index: {}]   ;;  %s4765_s2 = inlined_call_operand.vmem [shape: f32[2,64,32], index: 2, kind: input, shape index: {}]   ;;  %s4766_s3 = inlined_call_operand.vmem [shape: f32[32,32], index: 3, kind: input, shape index: {}]   ;;  %s4767_s4 = inlined_call_operand.vmem [shape: f32[32,160], index: 4, kind: input, shape index: {}]   ;;  %s4768_s5 = inlined_call_operand.vmem [shape: f32[32,128], index: 5, kind: input, shape index: {}]   ;;  %s4769_s6 = inlined_call_operand.vmem [shape: f32[32,128], index: 6, kind: input, shape index: {}]   ;;  %s4770_s7 = inlined_call_operand.vmem [shape: f32[32,128], index: 7, kind: input, shape index: {}]   ;;  %s4771_s8 = inlined_call_operand.vmem [shape: f32[8,128], index: 8, kind: input, shape index: {}]   ;;  %s4772_s9 = inlined_call_operand.hbm [shape: f32[18,128], index: 9, kind: output, shape index: {}]  }
   0x1   :  { %15 = vsyncpa [#allocation6], 0 }
   0x2   :  { %16 = vsyncpa [#allocation4], 0  ;;  %s3961_s30 = smov [#allocation2]   ;;  %s3889_s13 = scalar_lea.hbm %s4763_s0, 384 }
   0x3   :  { %s22_s10 = sshll.u32 %s3961_s30, 4  ;;  %p3890_p0 = scmp.ne.s32.totalorder %s4763_s0, %s3889_s13  ;;  %s23_s10 = int_to_ptr.vmem [resolvable:$true] %s22_s10 }
   0x4   :  { %p3893_p1 = scmp.lt.u32.totalorder %s3889_s13, %s4763_s0 }
   0x6   :  { %p3895_p2 = pnand %p3893_p1, %p3890_p0 }
   0x8   :  { %3898 = shalt.err (!%p3895_p2)
}
   0x9   :  { %s3899_s18 = scalar_lea.vmem %s23_s10, 384  ;;  %p3904_p4 = scmp.lt.s32.totalorder %s23_s10, %s23_s10 }
   0xa   :  { %p3900_p3 = scmp.ne.s32.totalorder %s23_s10, %s3899_s18  ;;  %p3905_p5 = scmp.lt.s32.totalorder %s3899_s18, %s3899_s18 }
   0xc   :  { %p3906_p6 = por %p3905_p5, %p3904_p4 }
   0xe   :  { %p3907_p7 = pnand %p3906_p6, %p3900_p3 }
  0x10   :  { %3910 = shalt.err (!%p3907_p7)
}
  0x11   :  { %s3962_s19 = smov 128   ;;  %s3963_s20 = smov 8  }
  0x12   :  { %28 = dma.hbm_to_vmem [thread:$0]  %s4763_s0, 384, %s23_s10, [#allocation3], %s3962_s19, %s3962_s19, %s3963_s20  }
  0x13   :  { %s3964_s23 = smov [#allocation5]   ;;  %s3911_s27 = scalar_lea.hbm %s4764_s1, 256 }
  0x14   :  { %s34_s24 = sshll.u32 %s3964_s23, 4  ;;  %p3912_p8 = scmp.ne.s32.totalorder %s4764_s1, %s3911_s27  ;;  %s35_s24 = int_to_ptr.vmem [resolvable:$true] %s34_s24 }
  0x15   :  { %p3915_p9 = scmp.lt.u32.totalorder %s3911_s27, %s4764_s1 }
  0x17   :  { %p3917_p10 = pnand %p3915_p9, %p3912_p8 }
  0x19   :  { %3920 = shalt.err (!%p3917_p10)
}
  0x1a   :  { %s3921_s12 = scalar_lea.vmem %s35_s24, 256  ;;  %p3926_p12 = scmp.lt.s32.totalorder %s35_s24, %s35_s24 }
  0x1b   :  { %p3922_p11 = scmp.ne.s32.totalorder %s35_s24, %s3921_s12  ;;  %p3927_p13 = scmp.lt.s32.totalorder %s3921_s12, %s3921_s12 }
  0x1d   :  { %p3928_p0 = por %p3927_p13, %p3926_p12 }
  0x1f   :  { %p3929_p1 = pnand %p3928_p0, %p3922_p11 }
  0x21   :  { %3932 = shalt.err (!%p3929_p1)
}
  0x22   :  { %40 = dma.hbm_to_vmem [thread:$0]  %s4764_s1, 256, %s35_s24, [#allocation6], %s3962_s19, %s3962_s19, %s3963_s20  }
  0x23   :  { %3955 = dma.done.wait [#allocation3], 384  }
  0x24   :  { %3956 = vsyncadd [#allocation3], 4294966912 }
  0x25   :  { %3957 = dma.done.wait [#allocation6], 256  }
  0x26   :  { %3958 = vsyncadd [#allocation6], 4294967040  ;;  %v3965_v0 = vmov 0.0|0.0   ;;  %vm3966_vm0 = vmmov 0   ;;  %v3967_v1 = vmov 0.0   ;;  %v63_v2 = vld [vmem:[%s4765_s2] sm:$0xff] }
  0x27   :  { %3526 = vmatprep.subr.bf16.mxu0 %v3965_v0  ;;  %3360 = vmatprep.mubr.msk.f32.mxu0 %vm3966_vm0, %v3967_v1  ;;  %v64_v3 = vld [vmem:[%s4765_s2 + $0x8] sm:$0xff]  ;;  %v3208_v4 = vld [vmem:[%s4765_s2 + $0x40] sm:$0xff]  ;;  %v65_v7 = vld [vmem:[%s4765_s2 + $0x10] sm:$0xff]  ;;  %vm110_vm1 = vcmask 523264   ;;  %vm134_vm2 = vcmask 1041409   ;;  %vm300_vm3 = vcmask 261120  }
  0x28   :  { %v3527_v5 = vpack.c.bf16 %v64_v3, %v63_v2  ;;  %v3209_v6 = vld [vmem:[%s4765_s2 + $0x48] sm:$0xff]  ;;  %v66_v8 = vld [vmem:[%s4765_s2 + $0x18] sm:$0xff]  ;;  %v3210_v10 = vld [vmem:[%s4765_s2 + $0x50] sm:$0xff]  ;;  %vm392_vm4 = vcmask 1041408   ;;  %vm394_vm5 = vcmask 1043456   ;;  %vm396_vm6 = vcmask 1045504  }
  0x29   :  { %v3538_v9 = vpack.c.bf16 %v3209_v6, %v3208_v4  ;;  %v3211_v11 = vld [vmem:[%s4765_s2 + $0x58] sm:$0xff]  ;;  %v3530_v12 = vpack.c.bf16 %v66_v8, %v65_v7  ;;  %v3212_v14 = vld [vmem:[%s4765_s2 + $0x60] sm:$0xff]  ;;  %v3213_v15 = vld [vmem:[%s4765_s2 + $0x68] sm:$0xff]  ;;  %vm634_vm7 = vcmask 58368   ;;  %s3971_s27 = smov 64  }
  0x2a   :  { %3528 = vmatpush3.bf16.msra.mxu0 %v3527_v5  ;;  %v3542_v13 = vpack.c.bf16 %v3211_v11, %v3210_v10  ;;  %v67_v16 = vld [vmem:[%s4765_s2 + $0x20] sm:$0xff]  ;;  %v68_v17 = vld [vmem:[%s4765_s2 + $0x28] sm:$0xff]  ;;  %v61_v18 = vld [vmem:[#allocation5] sm:$0xff]  ;;  %v3546_v20 = vpack.c.bf16 %v3213_v15, %v3212_v14 }
  0x2b   :  { %3539 = vmatprep.subr.bf16.mxu1 %v3538_v9  ;;  %3529 = vmatprep.subr.bf16.mxu0 %v3965_v0  ;;  %v62_v19 = vld [vmem:[#allocation5 + $0x8] sm:$0xff]  ;;  %v111_v21 = vsel %vm110_vm1, %v61_v18, 0.0  ;;  %v3533_v23 = vpack.c.bf16 %v68_v17, %v67_v16  ;;  %v3214_v24 = vld [vmem:[%s4765_s2 + $0x70] sm:$0xff]  ;;  %v3215_v25 = vld [vmem:[%s4765_s2 + $0x78] sm:$0xff] }
  0x2c   :  { %3541 = vmatpush3.bf16.msra.mxu1 %v3538_v9  ;;  %v118_v22 = vsel %vm110_vm1, %v62_v19, 0.0  ;;  %3379 = vmatprep.mubr.msk.f32.mxu1 %vm110_vm1, %v61_v18  ;;  %v112_v26 = vrot.slane %v111_v21, 4  ;;  %v69_v28 = vld [vmem:[%s4765_s2 + $0x30] sm:$0xff]  ;;  %v70_v29 = vld [vmem:[%s4765_s2 + $0x38] sm:$0xff]  ;;  %v85_v32 = vld [vmem:[%s4767_s4 + $0x8] sm:$0xff]  ;;  %v3550_v34 = vpack.c.bf16 %v3215_v25, %v3214_v24 }
  0x2d   :  { %3543 = vmatprep.subr.bf16.mxu1 %v3542_v13  ;;  %v119_v27 = vrot.slane %v118_v22, 4  ;;  %v87_v33 = vld [vmem:[%s4767_s4 + $0x18] sm:$0xff]  ;;  %v3536_v35 = vpack.c.bf16 %v70_v29, %v69_v28  ;;  %v80_v38 = vld [vmem:[%s4766_s3] sm:$0xff]  ;;  %v81_v39 = vld [vmem:[%s4766_s3 + $0x8] sm:$0xff] }
  0x2e   :  { %3531 = vmatpush3.bf16.msra.mxu0 %v3530_v12  ;;  %v113_v30 = vadd.f32 %v112_v26, %v111_v21  ;;  %v4122_v40 = vpack.c.bf16 %v87_v33, %v85_v32  ;;  %v3554_v43 = vpack.c.bf16 %v81_v39, %v80_v38  ;;  %v84_v46 = vld [vmem:[%s4767_s4] sm:$0xff]  ;;  %v86_v47 = vld [vmem:[%s4767_s4 + $0x10] sm:$0xff]  ;;  %v89_v54 = vld [vmem:[%s4767_s4 + $0x28] sm:$0xff]  ;;  %v571_v33 = vlaneseq }
  0x2f   :  { %3532 = vmatprep.subr.bf16.mxu0 %v3965_v0  ;;  %v120_v31 = vadd.f32 %v119_v27, %v118_v22  ;;  %v4131_v52 = vpack.c.bf16 %v86_v47, %v84_v46  ;;  %v91_v55 = vld [vmem:[%s4767_s4 + $0x38] sm:$0xff]  ;;  %v88_v57 = vld [vmem:[%s4767_s4 + $0x20] sm:$0xff]  ;;  %v90_v58 = vld [vmem:[%s4767_s4 + $0x30] sm:$0xff] }
  0x30   :  { %3545 = vmatpush3.bf16.msra.mxu1 %v3542_v13  ;;  %v114_v36 = vrot.slane %v113_v30, 2  ;;  %v4144_v56 = vpack.c.bf16 %v91_v55, %v89_v54  ;;  %v4152_v59 = vpack.c.bf16 %v90_v58, %v88_v57  ;;  %v82_v60 = vld [vmem:[%s4766_s3 + $0x10] sm:$0xff]  ;;  %v83_v61 = vld [vmem:[%s4766_s3 + $0x18] sm:$0xff]  ;;  %v3218_v63 = vld [vmem:[%s4771_s8 + $0x1] ss:$0 sm:$0xff] }
  0x31   :  { %3547 = vmatprep.subr.bf16.mxu1 %v3546_v20  ;;  %v121_v37 = vrot.slane %v120_v31, 2  ;;  %v3558_v62 = vpack.c.bf16 %v83_v61, %v82_v60  ;;  %v3216_v2 = vld [vmem:[%s4771_s8] ss:$0 sm:$0xff]  ;;  %v97_v7 = vld [vmem:[%s4769_s6 + $0x8] sm:$0xff]  ;;  %v98_v16 = vld [vmem:[%s4769_s6 + $0x10] sm:$0xff] }
  0x32   :  { %3534 = vmatpush3.bf16.msra.mxu0 %v3533_v23  ;;  %v115_v41 = vadd.f32 %v114_v36, %v113_v30  ;;  %v96_v6 = vld [vmem:[%s4769_s6] sm:$0xff]  ;;  %v99_v17 = vld [vmem:[%s4769_s6 + $0x18] sm:$0xff]  ;;  %v383_v27 = vld [vmem:[#allocation2 + $0x8] sm:$0xff] }
  0x33   :  { %3535 = vmatprep.subr.bf16.mxu0 %v3965_v0  ;;  %v122_v42 = vadd.f32 %v121_v37, %v120_v31  ;;  %v3563_v14 = vpack.c.bf16 %v97_v7, %v96_v6  ;;  %v382_v23 = vld [vmem:[#allocation2] sm:$0xff]  ;;  %v384_v29 = vld [vmem:[#allocation2 + $0x10] sm:$0x3]  ;;  %v3968_v31 = vmov 1966171168  }
  0x34   :  { %3549 = vmatpush3.bf16.msra.mxu1 %v3546_v20  ;;  %v116_v44 = vrot.slane %v115_v41, 1  ;;  %v3566_v20 = vpack.c.bf16 %v99_v17, %v98_v16  ;;  %v569_v32 = vunpack.c.l.s4 %v3968_v31  ;;  %v4245_v58 = vld [vmem:[%s4771_s8 + $0x4] ss:$0 sm:$0xff] }
  0x35   :  { %3551 = vmatprep.subr.bf16.mxu1 %v3550_v34  ;;  %v123_v45 = vrot.slane %v122_v42, 1 }
  0x36   :  { %3537 = vmatpush3.bf16.msra.mxu0 %v3536_v35  ;;  %v117_v48 = vadd.f32 %v116_v44, %v115_v41  ;;  %v572_v35 = vshrl.u32 %v571_v33, 7  ;;  %v3221_v41 = vld [vmem:[%s4771_s8 + $0x2] ss:$0 sm:$0xff] }
  0x37   :  { %3569 = vmatprep.subr.bf16.mxu0 %v4122_v40  ;;  %v124_v49 = vadd.f32 %v123_v45, %v122_v42 }
  0x38   :  { %3553 = vmatpush3.bf16.msra.mxu1 %v3550_v34  ;;  %v126_v50 = vmul.f32 0.125, %v117_v48  ;;  %v570_v34 = vunpack.c.0.s8 %v569_v32  ;;  %v4228_v44 = vsub.s32 0, %v572_v35 }
  0x39   :  { %3555 = vmatprep.subr.bf16.mxu1 %v3554_v43  ;;  %v127_v51 = vmul.f32 0.125, %v124_v49 }
  0x3a   :  { %v4220_v36 = vsub.s32 %v570_v34, %v572_v35  ;;  %v92_v34 = vld [vmem:[%s4768_s5] sm:$0xff] }
  0x3b   :  { %3380 = vmatmul.mubr.msk.f32.vlgmr.msra.gmra.mrb[0].mxu1 %vm110_vm1, %v62_v19  ;;  %v135_v53 = vsel %vm134_vm2, %v127_v51, %v126_v50 }
  0x3c   :  { %3557 = vmatpush3.bf16.msra.mxu1 %v3554_v43  ;;  %3361 = vmatmul.mubr.msk.f32.vlgmr.msra.gmra.mrb[0].mxu0 %vm110_vm1, %v135_v53 }
  0x3d   :  { %3571 = vmatpush1.bf16.msra.mxu0 %v4131_v52  ;;  %560 = vmatprep.mubr.f32.mxu0 %v3967_v1 }
  0x3e   :  { %3573 = vmatprep.subr.bf16.mxu0 %v4144_v56  ;;  %3559 = vmatprep.subr.bf16.mxu1 %v3558_v62 }
  0x40   :  { %3561 = vmatpush3.bf16.msra.mxu1 %v3558_v62 }
  0x41   :  { %3575 = vmatpush1.bf16.msra.mxu0 %v4152_v59  ;;  %3562 = vmatprep.subr.bf16.mxu1 %v3965_v0 }
  0x42   :  { %3583 = vmatprep.subr.bf16.mxu0 %v4122_v40 }
 0x10e   :  { %v3381_v3 = vpop.f32.mrb[0].mxu1 }
 0x10f   :  { %v291_v4 = vadd.f32 %v3381_v3, %v3218_v63  ;;  %v285_v5 = vpop.f32.mrb[1].mxu1  ;;  %v204_v8 = vpop.f32.mrb[0].mxu0 }
 0x110   :  { %v286_v9 = vadd.f32 %v3218_v63, %v285_v5  ;;  %v205_v10 = vadd.f32 %v3216_v2, %v204_v8  ;;  %v3362_v11 = vpop.f32.mrb[1].mxu0 }
 0x111   :  { %v4176_v12 = vmax.f32 %v291_v4, 0.0  ;;  %v4256_v4 = vld [vmem:[%s4771_s8 + $0x3] ss:$0 sm:$0xff] }
 0x112   :  { %v4178_v13 = vmax.f32 %v286_v9, 0.0  ;;  %v4180_v15 = vmax.f32 %v205_v10, 0.0 }
 0x114   :  { %3390 = vmatprep.mubr.msk.f32.mxu1 %vm300_vm3, %v4178_v13  ;;  %3228 = vmatmul.mubr.msk.f32.vlgmr.msra.gmra.mrb[2].mxu0 %vm300_vm3, %v4180_v15  ;;  %v386_v18 = vrot.slane %v4180_v15, 6  ;;  %v388_v19 = vrot.slane %v4180_v15, 4  ;;  %v390_v21 = vrot.slane %v4180_v15, 2  ;;  %v400_v30 = vadd.f32 %v384_v29, %v4180_v15 }
 0x115   :  { %3391 = vmatmul.mubr.msk.f32.vlgmr.msra.gmra.mrb[2].mxu1 %vm300_vm3, %v4176_v12  ;;  %3585 = vmatpush1.bf16.msra.mxu0 %v4131_v52 }
 0x116   :  { %3564 = vmatpush3.bf16.msra.mxu1 %v3563_v14  ;;  %3401 = vmatprep.mubr.msk.f32.mxu1 %vm3966_vm0, %v3967_v1  ;;  %v393_v22 = vsel %vm392_vm4, %v4180_v15, %v386_v18  ;;  %v623_v18 = vand.u32 127, %v571_v33 }
 0x117   :  { %3565 = vmatprep.subr.bf16.mxu1 %v3965_v0  ;;  %v395_v24 = vsel %vm394_vm5, %v393_v22, %v388_v19  ;;  %3587 = vmatprep.subr.bf16.mxu0 %v4144_v56 }
 0x118   :  { %850 = vmatprep.mubr.f32.mxu0 %v3967_v1  ;;  %v397_v25 = vsel %vm396_vm6, %v395_v24, %v390_v21  ;;  %v4262_v19 = vsub.s32 %v623_v18, %v572_v35 }
 0x119   :  { %v398_v26 = vadd.f32 %v397_v25, %v382_v23  ;;  %3589 = vmatpush1.bf16.msra.mxu0 %v4152_v59  ;;  %v399_v28 = vadd.f32 %v397_v25, %v383_v27 }
 0x11a   :  { %3567 = vmatpush3.bf16.msra.mxu1 %v3566_v20  ;;  %3597 = vmatprep.subr.bf16.mxu0 %v4122_v40 }
 0x11b   :  { %3576 = vmatprep.subr.bf16.mxu1 %v3965_v0 }
 0x11d   :  { %3402 = vmatmul.mubr.msk.f32.vlgmr.msra.gmra.mrb[4].mxu1 %vm300_vm3, %v398_v26  ;;  %v3969_v26 = vmov 0  }
 0x11e   :  { %3404 = vmatprep.mubr.msk.f32.mxu1 %vm3966_vm0, %v3967_v1  ;;  %3713 = vset.pattern.permute.xlu0 %v3969_v26 }
 0x11f   :  { %3712 = vset.pattern.permute.xlu1 %v3969_v26 }
 0x121   :  { %3405 = vmatmul.mubr.msk.f32.gmra.mrb[6].mxu1 %vm300_vm3, %v399_v28  ;;  %v4268_v28 = vsub.s32 1, %v572_v35  ;;  %v94_v35 = vld [vmem:[%s4768_s5 + $0x10] sm:$0xff] }
 0x122   :  { %3407 = vmatprep.mubr.msk.f32.mxu1 %vm3966_vm0, %v3967_v1 }
 0x125   :  { %3408 = vmatmul.mubr.msk.f32.gmra.mrb[8].mxu1 %vm300_vm3, %v400_v30 }
 0x126   :  { %3418 = vmatprep.mubr.msk.f32.mxu1 %vm3966_vm0, %v3967_v1 }
 0x1e7   :  { %v4222_v37 = vpop.f32.mrb[2].mxu0 }
 0x1e8   :  { %v3392_v38 = vpop.f32.mrb[2].mxu1  ;;  %v564_v39 = vpop.f32.mrb[3].mxu0 }
 0x1e9   :  { %v373_v42 = vpop.f32.mrb[3].mxu1  ;;  %v574_v43 = vrot.slane %v564_v39, %v4220_v36  ;;  %v4236_v51 = vadd.f32 %v3392_v38, %v3221_v41  ;;  %v93_v38 = vld [vmem:[%s4768_s5 + $0x8] sm:$0xff] }
 0x1ea   :  { %v4231_v47 = vadd.f32 %v3221_v41, %v373_v42  ;;  %v4278_v39 = vpack.c.bf16 %v93_v38, %v92_v34  ;;  %v95_v41 = vld [vmem:[%s4768_s5 + $0x18] sm:$0xff]  ;;  %s3970_s5 = smov 32  }
 0x1eb   :  { %v575_v45 = vcombine.high %v574_v43, %v574_v43  ;;  %v582_v46 = vrot.slane %v574_v43, %v4220_v36  ;;  %v4288_v42 = vpack.c.bf16 %v95_v41, %v94_v35 }
 0x1ec   :  { %3578 = vmatpush3.bf16.msra.mxu1 %v4278_v39 }
 0x1ed   :  { %v589_v48 = vrot.slane %v575_v45, %v4220_v36  ;;  %v593_v49 = vrot.slane %v582_v46, %v4228_v44  ;;  %3579 = vmatprep.subr.bf16.mxu1 %v3965_v0 }
 0x1ef   :  { %v597_v50 = vrot.slane %v589_v48, %v4228_v44  ;;  %v600_v54 = vadd.f32 %v593_v49, %v4231_v47 }
 0x1f0   :  { %v4238_v53 = vpop.f32.mrb[4].mxu1  ;;  %3581 = vmatpush3.bf16.msra.mxu1 %v4288_v42 }
 0x1f1   :  { %v3403_v55 = vpop.f32.mrb[5].mxu1  ;;  %3714 = vtanh.f32 %v600_v54  ;;  %v601_v57 = vadd.f32 %v597_v50, %v4236_v51  ;;  %3590 = vmatprep.subr.bf16.mxu1 %v3965_v0 }
 0x1f3   :  { %3716 = vtanh.f32 %v601_v57 }
 0x1f4   :  { %v485_v60 = vpop.f32.mrb[6].mxu1 }
 0x1f5   :  { %v4248_v61 = vadd.f32 %v4245_v58, %v485_v60  ;;  %v3406_v62 = vpop.f32.mrb[7].mxu1 }
 0x1f8   :  { %v490_v63 = vpop.f32.mrb[8].mxu1 }
 0x1f9   :  { %v4251_v2 = vadd.f32 %v4245_v58, %v490_v63  ;;  %v3409_v3 = vpop.f32.mrb[9].mxu1 }
 0x1fb   :  { %v3715_v5 = vpop.eup %3714 }
 0x1fc   :  { %v608_v6 = vmul.f32 %v3715_v5, %v4256_v4 }
 0x1fd   :  { %v3717_v7 = vpop.eup %3716 }
 0x1fe   :  { %v610_v8 = vsel %vm300_vm3, %v608_v6, 0.0  ;;  %v609_v9 = vmul.f32 %v3717_v7, %v4256_v4 }
 0x1ff   :  { %611 = vadd.xlane.f32.xlu0 %v610_v8 }
 0x200   :  { %v613_v10 = vsel %vm300_vm3, %v609_v9, 0.0 }
 0x203   :  { %614 = vadd.xlane.f32.xlu0 %v613_v10 }
 0x28c   :  { %v612_v11 = vpop.xlane.xlu0 %611 }
 0x28d   :  { %v616_v14 = vmul.f32 1.442695, %v612_v11 }
 0x28f   :  { %3718 = vpow2.f32 %v616_v14  ;;  %v4306_v14 = vadd.f32 %v4245_v58, %v4238_v53 }
 0x290   :  { %v615_v16 = vpop.xlane.xlu0 %614 }
 0x291   :  { %v618_v17 = vmul.f32 1.442695, %v615_v16 }
 0x293   :  { %3720 = vpow2.f32 %v618_v17 }
 0x299   :  { %v3719_v20 = vpop.eup %3718 }
 0x29a   :  { %v627_v22 = vrot.slane %v3719_v20, %v4262_v19 }
 0x29d   :  { %v3721_v21 = vpop.eup %3720 }
 0x29e   :  { %v631_v23 = vrot.slane %v3721_v21, %v4262_v19 }
 0x2a0   :  { %v632_v24 = vsel %vm134_vm2, %v631_v23, %v627_v22 }
 0x2a1   :  { %v635_v25 = vsel %vm634_vm7, %v632_v24, 0.0 }
 0x2a2   :  { %636 = vadd.xlane.f32.xlu1 %v635_v25 }
 0x32f   :  { %v637_v27 = vpop.xlane.xlu1 %636 }
 0x330   :  { %3722 = vrcp.f32 %v637_v27 }
 0x33a   :  { %v3723_v29 = vpop.eup %3722 }
 0x33b   :  { %v647_v30 = vrot.slane %v3723_v29, %v4268_v28  ;;  %v643_v31 = vrot.slane %v3723_v29, %v4228_v44 }
 0x33d   :  { %v651_v32 = vmul.f32 %v3721_v21, %v647_v30  ;;  %v650_v33 = vmul.f32 %v3719_v20, %v643_v31 }
 0x33f   :  { %659 = vperm.xlu0 %3713, %v651_v32   ;;  %654 = vperm.xlu1 %3712, %v650_v33  }
 0x3be   :  { %v660_v43 = vpop.permute.xlu0 %659  ;;  %v655_v45 = vpop.permute.xlu1 %654 }
 0x3bf   :  { %v663_v46 = vmul.f32 %v660_v43, %v4176_v12  ;;  %v662_v48 = vmul.f32 %v655_v45, %v4178_v13 }
 0x3c1   :  { %v671_v49 = vsel %vm300_vm3, %v663_v46, 0.0  ;;  %v664_v50 = vsel %vm300_vm3, %v662_v48, 0.0 }
 0x3c2   :  { %v672_v54 = vrot.slane %v671_v49, 4  ;;  %v665_v55 = vrot.slane %v664_v50, 4 }
 0x3c4   :  { %v673_v57 = vadd.f32 %v672_v54, %v671_v49  ;;  %v666_v60 = vadd.f32 %v665_v55, %v664_v50 }
 0x3c6   :  { %v674_v62 = vrot.slane %v673_v57, 2  ;;  %v667_v63 = vrot.slane %v666_v60, 2 }
 0x3c8   :  { %v675_v3 = vadd.f32 %v674_v62, %v673_v57  ;;  %v668_v5 = vadd.f32 %v667_v63, %v666_v60 }
 0x3ca   :  { %v676_v6 = vrot.slane %v675_v3, 1  ;;  %v669_v7 = vrot.slane %v668_v5, 1 }
 0x3cc   :  { %v677_v8 = vadd.f32 %v676_v6, %v675_v3  ;;  %v670_v9 = vadd.f32 %v669_v7, %v668_v5 }
 0x3ce   :  { %v680_v10 = vsel %vm134_vm2, %v677_v8, %v670_v9 }
 0x3cf   :  { %3419 = vmatmul.mubr.msk.f32.vlgmr.msra.gmra.mrb[10].mxu1 %vm300_vm3, %v680_v10 }
 0x3d0   :  { %3592 = vmatpush3.bf16.msra.mxu1 %v4278_v39  ;;  %3429 = vmatprep.mubr.msk.f32.mxu1 %vm3966_vm0, %v3967_v1 }
 0x3d1   :  { %3593 = vmatprep.subr.bf16.mxu1 %v3965_v0 }
 0x3d4   :  { %3595 = vmatpush3.bf16.msra.mxu1 %v4288_v42 }
 0x3d5   :  { %3604 = vmatprep.subr.bf16.mxu1 %v3965_v0 }
 0x4a2   :  { %v749_v11 = vpop.f32.mrb[10].mxu1 }
 0x4a3   :  { %v750_v16 = vadd.f32 %v749_v11, %v4222_v37  ;;  %v3420_v17 = vpop.f32.mrb[11].mxu1 }
 0x4a5   :  { %v753_v18 = vadd.f32 %v750_v16, %v4306_v14 }
 0x4a7   :  { %3724 = vtanh.f32 %v753_v18  ;;  %v3231_v21 = vmul.f32 -1.442695, %v753_v18 }
 0x4a9   :  { %3726 = vpow2.f32 %v3231_v21 }
 0x4b1   :  { %v3725_v20 = vpop.eup %3724 }
 0x4b2   :  { %766 = vrot.lane.b32.xlu1 %v3725_v20, %s3970_s5 }
 0x4b3   :  { %v3727_v22 = vpop.eup %3726 }
 0x4b4   :  { %v757_v23 = vadd.f32 1.0, %v3727_v22 }
 0x4b6   :  { %761 = vrot.lane.b32.xlu1 %v4180_v15, %s3970_s5  ;;  %3728 = vrcp.f32 %v757_v23 }
 0x4c0   :  { %v3729_v53 = vpop.eup %3728 }
 0x524   :  { %v767_v58 = vpop.permute.xlu1 %766 }
 0x525   :  { %v769_v24 = vmul.f32 %v3729_v53, %v767_v58 }
 0x527   :  { %771 = vrot.lane.b32.xlu1 %v769_v24, %s3970_s5 }
 0x528   :  { %v762_v37 = vpop.permute.xlu1 %761 }
 0x529   :  { %v764_v25 = vmul.f32 %v3729_v53, %v762_v37 }
 0x599   :  { %v772_v26 = vpop.permute.xlu1 %771 }
 0x59a   :  { %v4314_v27 = vadd.f32 %v772_v26, %v764_v25 }
 0x59c   :  { %3730 = vtanh.f32 %v4314_v27 }
 0x5a6   :  { %v3731_v29 = vpop.eup %3730 }
 0x5a7   :  { %777 = vrot.lane.b32.xlu1 %v3731_v29, %s3970_s5 }
 0x619   :  { %v778_v15 = vpop.permute.xlu1 %777 }
 0x61a   :  { %v4318_v30 = vmul.f32 %v3729_v53, %v778_v15 }
 0x61c   :  { %782 = vrot.lane.b32.xlu1 %v4318_v30, %s3971_s27 }
 0x68e   :  { %v783_v31 = vpop.permute.xlu1 %782 }
 0x68f   :  { %3232 = vmatmul.mubr.msk.f32.vlgmr.msra.gmra.mrb[4].mxu0 %vm300_vm3, %v783_v31 }
 0x690   :  { %3599 = vmatpush1.bf16.msra.mxu0 %v4131_v52  ;;  %1133 = vmatprep.mubr.f32.mxu0 %v3967_v1 }
 0x691   :  { %3601 = vmatprep.subr.bf16.mxu0 %v4144_v56 }
 0x694   :  { %3603 = vmatpush1.bf16.msra.mxu0 %v4152_v59 }
 0x695   :  { %3611 = vmatprep.subr.bf16.mxu0 %v4122_v40 }
 0x762   :  { %v4328_v32 = vpop.f32.mrb[4].mxu0 }
 0x763   :  { %v854_v33 = vpop.f32.mrb[5].mxu0 }
 0x764   :  { %v864_v34 = vrot.slane %v854_v33, %v4220_v36 }
 0x766   :  { %v865_v38 = vcombine.high %v864_v34, %v864_v34  ;;  %v872_v35 = vrot.slane %v864_v34, %v4220_v36 }
 0x768   :  { %v879_v41 = vrot.slane %v865_v38, %v4220_v36  ;;  %v883_v43 = vrot.slane %v872_v35, %v4228_v44 }
 0x76a   :  { %v887_v45 = vrot.slane %v879_v41, %v4228_v44  ;;  %v890_v46 = vadd.f32 %v883_v43, %v4231_v47 }
 0x76c   :  { %v891_v48 = vadd.f32 %v887_v45, %v4236_v51  ;;  %3732 = vtanh.f32 %v890_v46 }
 0x76e   :  { %3734 = vtanh.f32 %v891_v48 }
 0x776   :  { %v3733_v49 = vpop.eup %3732 }
 0x777   :  { %v894_v50 = vmul.f32 %v3733_v49, %v4256_v4 }
 0x778   :  { %v3735_v54 = vpop.eup %3734 }
 0x779   :  { %v896_v55 = vsel %vm300_vm3, %v894_v50, 0.0  ;;  %v895_v57 = vmul.f32 %v3735_v54, %v4256_v4  ;;  %v1037_v54 = vrot.slane %v4306_v14, 2 }
 0x77a   :  { %897 = vadd.xlane.f32.xlu1 %v896_v55 }
 0x77b   :  { %v899_v60 = vsel %vm300_vm3, %v895_v57, 0.0 }
 0x77c   :  { %900 = vadd.xlane.f32.xlu0 %v899_v60 }
 0x807   :  { %v898_v62 = vpop.xlane.xlu1 %897 }
 0x808   :  { %v902_v63 = vmul.f32 1.442695, %v898_v62 }
 0x809   :  { %v901_v3 = vpop.xlane.xlu0 %900 }
 0x80a   :  { %3736 = vpow2.f32 %v902_v63  ;;  %v904_v5 = vmul.f32 1.442695, %v901_v3 }
 0x80c   :  { %3738 = vpow2.f32 %v904_v5 }
 0x814   :  { %v3737_v6 = vpop.eup %3736 }
 0x815   :  { %v911_v8 = vrot.slane %v3737_v6, %v4262_v19 }
 0x816   :  { %v3739_v7 = vpop.eup %3738 }
 0x817   :  { %v915_v9 = vrot.slane %v3739_v7, %v4262_v19 }
 0x819   :  { %v916_v10 = vsel %vm134_vm2, %v915_v9, %v911_v8 }
 0x81a   :  { %v918_v11 = vsel %vm634_vm7, %v916_v10, 0.0 }
 0x81b   :  { %919 = vadd.xlane.f32.xlu1 %v918_v11 }
 0x8a8   :  { %v920_v16 = vpop.xlane.xlu1 %919 }
 0x8a9   :  { %3740 = vrcp.f32 %v920_v16 }
 0x8b3   :  { %v3741_v17 = vpop.eup %3740 }
 0x8b4   :  { %v930_v18 = vrot.slane %v3741_v17, %v4268_v28  ;;  %v926_v20 = vrot.slane %v3741_v17, %v4228_v44 }
 0x8b6   :  { %v934_v21 = vmul.f32 %v3739_v7, %v930_v18  ;;  %v933_v22 = vmul.f32 %v3737_v6, %v926_v20 }
 0x8b8   :  { %942 = vperm.xlu0 %3713, %v934_v21   ;;  %937 = vperm.xlu1 %3712, %v933_v22  }
 0x937   :  { %v943_v23 = vpop.permute.xlu0 %942  ;;  %v938_v53 = vpop.permute.xlu1 %937 }
 0x938   :  { %v946_v58 = vmul.f32 %v943_v23, %v4176_v12  ;;  %v945_v24 = vmul.f32 %v938_v53, %v4178_v13 }
 0x93a   :  { %v954_v37 = vsel %vm300_vm3, %v946_v58, 0.0  ;;  %v947_v25 = vsel %vm300_vm3, %v945_v24, 0.0 }
 0x93b   :  { %v955_v26 = vrot.slane %v954_v37, 4  ;;  %v948_v29 = vrot.slane %v947_v25, 4 }
 0x93d   :  { %v956_v15 = vadd.f32 %v955_v26, %v954_v37  ;;  %v949_v31 = vadd.f32 %v948_v29, %v947_v25 }
 0x93f   :  { %v957_v33 = vrot.slane %v956_v15, 2  ;;  %v950_v34 = vrot.slane %v949_v31, 2 }
 0x941   :  { %v958_v38 = vadd.f32 %v957_v33, %v956_v15  ;;  %v951_v35 = vadd.f32 %v950_v34, %v949_v31 }
 0x943   :  { %v959_v41 = vrot.slane %v958_v38, 1  ;;  %v952_v43 = vrot.slane %v951_v35, 1 }
 0x945   :  { %v960_v45 = vadd.f32 %v959_v41, %v958_v38  ;;  %v953_v46 = vadd.f32 %v952_v43, %v951_v35 }
 0x947   :  { %v963_v48 = vsel %vm134_vm2, %v960_v45, %v953_v46 }
 0x948   :  { %3430 = vmatmul.mubr.msk.f32.vlgmr.msra.gmra.mrb[12].mxu1 %vm300_vm3, %v963_v48 }
 0x949   :  { %3606 = vmatpush3.bf16.msra.mxu1 %v4278_v39  ;;  %3440 = vmatprep.mubr.msk.f32.mxu1 %vm3966_vm0, %v3967_v1 }
 0x94a   :  { %3607 = vmatprep.subr.bf16.mxu1 %v3965_v0 }
 0x94d   :  { %3609 = vmatpush3.bf16.msra.mxu1 %v4288_v42 }
 0x94e   :  { %3618 = vmatprep.subr.bf16.mxu1 %v3965_v0 }
 0xa1b   :  { %v1032_v49 = vpop.f32.mrb[12].mxu1 }
 0xa1c   :  { %v1033_v50 = vadd.f32 %v1032_v49, %v4328_v32  ;;  %v3431_v55 = vpop.f32.mrb[13].mxu1 }
 0xa1e   :  { %v1039_v57 = vadd.f32 %v1037_v54, %v1033_v50 }
 0xa20   :  { %3742 = vtanh.f32 %v1039_v57  ;;  %v3234_v62 = vmul.f32 -1.442695, %v1039_v57 }
 0xa22   :  { %3744 = vpow2.f32 %v3234_v62 }
 0xa2a   :  { %v3743_v60 = vpop.eup %3742 }
 0xa2b   :  { %1049 = vrot.lane.b32.xlu1 %v3743_v60, %s3970_s5 }
 0xa2c   :  { %v3745_v63 = vpop.eup %3744 }
 0xa2d   :  { %v1043_v3 = vadd.f32 1.0, %v3745_v63 }
 0xa2f   :  { %3746 = vrcp.f32 %v1043_v3 }
 0xa39   :  { %v3747_v5 = vpop.eup %3746 }
 0xa3a   :  { %v1047_v32 = vmul.f32 %v3747_v5, %v4314_v27 }
 0xa9d   :  { %v1050_v6 = vpop.permute.xlu1 %1049 }
 0xa9e   :  { %v1052_v7 = vmul.f32 %v3747_v5, %v1050_v6 }
 0xaa0   :  { %1054 = vrot.lane.b32.xlu1 %v1052_v7, %s3970_s5 }
 0xb12   :  { %v1055_v8 = vpop.permute.xlu1 %1054 }
 0xb13   :  { %v4364_v9 = vadd.f32 %v1055_v8, %v1047_v32 }
 0xb15   :  { %3748 = vtanh.f32 %v4364_v9 }
 0xb1f   :  { %v3749_v10 = vpop.eup %3748 }
 0xb20   :  { %1060 = vrot.lane.b32.xlu0 %v3749_v10, %s3970_s5 }
 0xb92   :  { %v1061_v11 = vpop.permute.xlu0 %1060 }
 0xb93   :  { %v4368_v16 = vmul.f32 %v3747_v5, %v1061_v11 }
 0xb95   :  { %1065 = vrot.lane.b32.xlu1 %v4368_v16, %s3971_s27 }
 0xc07   :  { %v1066_v17 = vpop.permute.xlu1 %1065 }
 0xc08   :  { %3235 = vmatmul.mubr.msk.f32.vlgmr.msra.gmra.mrb[6].mxu0 %vm300_vm3, %v1066_v17 }
 0xc09   :  { %3613 = vmatpush1.bf16.msra.mxu0 %v4131_v52  ;;  %1415 = vmatprep.mubr.f32.mxu0 %v3967_v1 }
 0xc0a   :  { %3615 = vmatprep.subr.bf16.mxu0 %v4144_v56 }
 0xc0d   :  { %3617 = vmatpush1.bf16.msra.mxu0 %v4152_v59 }
 0xc0e   :  { %3625 = vmatprep.subr.bf16.mxu0 %v4122_v40 }
 0xcdb   :  { %v4378_v27 = vpop.f32.mrb[6].mxu0 }
 0xcdc   :  { %v1137_v18 = vpop.f32.mrb[7].mxu0 }
 0xcdd   :  { %v1147_v20 = vrot.slane %v1137_v18, %v4220_v36 }
 0xcdf   :  { %v1148_v21 = vcombine.high %v1147_v20, %v1147_v20  ;;  %v1155_v22 = vrot.slane %v1147_v20, %v4220_v36 }
 0xce1   :  { %v1162_v23 = vrot.slane %v1148_v21, %v4220_v36  ;;  %v1166_v53 = vrot.slane %v1155_v22, %v4228_v44 }
 0xce3   :  { %v1170_v58 = vrot.slane %v1162_v23, %v4228_v44  ;;  %v1173_v24 = vadd.f32 %v1166_v53, %v4231_v47 }
 0xce5   :  { %v1174_v37 = vadd.f32 %v1170_v58, %v4236_v51  ;;  %3750 = vtanh.f32 %v1173_v24 }
 0xce7   :  { %3752 = vtanh.f32 %v1174_v37 }
 0xcef   :  { %v3751_v25 = vpop.eup %3750 }
 0xcf0   :  { %v1177_v26 = vmul.f32 %v3751_v25, %v4256_v4 }
 0xcf1   :  { %v3753_v29 = vpop.eup %3752 }
 0xcf2   :  { %v1179_v15 = vsel %vm300_vm3, %v1177_v26, 0.0  ;;  %v1178_v31 = vmul.f32 %v3753_v29, %v4256_v4 }
 0xcf3   :  { %1180 = vadd.xlane.f32.xlu0 %v1179_v15  ;;  %v1319_v15 = vrot.slane %v4306_v14, 4 }
 0xcf4   :  { %v1182_v33 = vsel %vm300_vm3, %v1178_v31, 0.0 }
 0xcf5   :  { %1183 = vadd.xlane.f32.xlu1 %v1182_v33 }
 0xd80   :  { %v1181_v34 = vpop.xlane.xlu0 %1180 }
 0xd81   :  { %v1185_v38 = vmul.f32 1.442695, %v1181_v34 }
 0xd82   :  { %v1184_v35 = vpop.xlane.xlu1 %1183 }
 0xd83   :  { %3754 = vpow2.f32 %v1185_v38  ;;  %v1187_v41 = vmul.f32 1.442695, %v1184_v35 }
 0xd85   :  { %3756 = vpow2.f32 %v1187_v41 }
 0xd8d   :  { %v3755_v43 = vpop.eup %3754 }
 0xd8e   :  { %v1194_v46 = vrot.slane %v3755_v43, %v4262_v19 }
 0xd8f   :  { %v3757_v45 = vpop.eup %3756 }
 0xd90   :  { %v1198_v48 = vrot.slane %v3757_v45, %v4262_v19 }
 0xd92   :  { %v1199_v49 = vsel %vm134_vm2, %v1198_v48, %v1194_v46 }
 0xd93   :  { %v1201_v50 = vsel %vm634_vm7, %v1199_v49, 0.0 }
 0xd94   :  { %1202 = vadd.xlane.f32.xlu0 %v1201_v50 }
 0xe21   :  { %v1203_v54 = vpop.xlane.xlu0 %1202 }
 0xe22   :  { %3758 = vrcp.f32 %v1203_v54  ;;  %v3035_v54 = vrot.slane %v4368_v16, 6 }
 0xe2c   :  { %v3759_v55 = vpop.eup %3758 }
 0xe2d   :  { %v1213_v57 = vrot.slane %v3759_v55, %v4268_v28  ;;  %v1209_v60 = vrot.slane %v3759_v55, %v4228_v44 }
 0xe2f   :  { %v1217_v62 = vmul.f32 %v3757_v45, %v1213_v57  ;;  %v1216_v63 = vmul.f32 %v3755_v43, %v1209_v60 }
 0xe31   :  { %1225 = vperm.xlu1 %3712, %v1217_v62   ;;  %1220 = vperm.xlu0 %3713, %v1216_v63   ;;  %v3047_v62 = vsel %vm392_vm4, %v4318_v30, %v3035_v54 }
 0xeb0   :  { %v1226_v3 = vpop.permute.xlu1 %1225  ;;  %v1221_v5 = vpop.permute.xlu0 %1220 }
 0xeb1   :  { %v1229_v6 = vmul.f32 %v1226_v3, %v4176_v12  ;;  %v1228_v7 = vmul.f32 %v1221_v5, %v4178_v13 }
 0xeb3   :  { %v1237_v32 = vsel %vm300_vm3, %v1229_v6, 0.0  ;;  %v1230_v8 = vsel %vm300_vm3, %v1228_v7, 0.0 }
 0xeb4   :  { %v1238_v10 = vrot.slane %v1237_v32, 4  ;;  %v1231_v11 = vrot.slane %v1230_v8, 4 }
 0xeb6   :  { %v1239_v17 = vadd.f32 %v1238_v10, %v1237_v32  ;;  %v1232_v18 = vadd.f32 %v1231_v11, %v1230_v8 }
 0xeb8   :  { %v1240_v20 = vrot.slane %v1239_v17, 2  ;;  %v1233_v21 = vrot.slane %v1232_v18, 2 }
 0xeba   :  { %v1241_v22 = vadd.f32 %v1240_v20, %v1239_v17  ;;  %v1234_v23 = vadd.f32 %v1233_v21, %v1232_v18 }
 0xebc   :  { %v1242_v53 = vrot.slane %v1241_v22, 1  ;;  %v1235_v58 = vrot.slane %v1234_v23, 1 }
 0xebe   :  { %v1243_v24 = vadd.f32 %v1242_v53, %v1241_v22  ;;  %v1236_v37 = vadd.f32 %v1235_v58, %v1234_v23 }
 0xec0   :  { %v1246_v25 = vsel %vm134_vm2, %v1243_v24, %v1236_v37 }
 0xec1   :  { %3441 = vmatmul.mubr.msk.f32.vlgmr.msra.gmra.mrb[14].mxu1 %vm300_vm3, %v1246_v25 }
 0xec2   :  { %3620 = vmatpush3.bf16.msra.mxu1 %v4278_v39  ;;  %3451 = vmatprep.mubr.msk.f32.mxu1 %vm3966_vm0, %v3967_v1 }
 0xec3   :  { %3621 = vmatprep.subr.bf16.mxu1 %v3965_v0 }
 0xec6   :  { %3623 = vmatpush3.bf16.msra.mxu1 %v4288_v42 }
 0xec7   :  { %3632 = vmatprep.subr.bf16.mxu1 %v3965_v0 }
 0xf94   :  { %v1315_v26 = vpop.f32.mrb[14].mxu1 }
 0xf95   :  { %v1316_v29 = vadd.f32 %v1315_v26, %v4378_v27  ;;  %v3442_v31 = vpop.f32.mrb[15].mxu1 }
 0xf97   :  { %v1321_v33 = vadd.f32 %v1319_v15, %v1316_v29 }
 0xf99   :  { %3760 = vtanh.f32 %v1321_v33  ;;  %v3237_v38 = vmul.f32 -1.442695, %v1321_v33 }
 0xf9b   :  { %3762 = vpow2.f32 %v3237_v38 }
 0xfa3   :  { %v3761_v34 = vpop.eup %3760 }
 0xfa4   :  { %1331 = vrot.lane.b32.xlu1 %v3761_v34, %s3970_s5 }
 0xfa5   :  { %v3763_v35 = vpop.eup %3762 }
 0xfa6   :  { %v1325_v41 = vadd.f32 1.0, %v3763_v35 }
 0xfa8   :  { %3764 = vrcp.f32 %v1325_v41 }
 0xfb2   :  { %v3765_v43 = vpop.eup %3764 }
 0xfb3   :  { %v1329_v27 = vmul.f32 %v3765_v43, %v4364_v9 }
0x1016   :  { %v1332_v45 = vpop.permute.xlu1 %1331 }
0x1017   :  { %v1334_v46 = vmul.f32 %v3765_v43, %v1332_v45 }
0x1019   :  { %1336 = vrot.lane.b32.xlu0 %v1334_v46, %s3970_s5 }
0x108b   :  { %v1337_v48 = vpop.permute.xlu0 %1336 }
0x108c   :  { %v4414_v49 = vadd.f32 %v1337_v48, %v1329_v27 }
0x108e   :  { %3766 = vtanh.f32 %v4414_v49 }
0x1098   :  { %v3767_v50 = vpop.eup %3766 }
0x1099   :  { %1342 = vrot.lane.b32.xlu1 %v3767_v50, %s3970_s5 }
0x110b   :  { %v1343_v55 = vpop.permute.xlu1 %1342 }
0x110c   :  { %v1345_v57 = vmul.f32 %v3765_v43, %v1343_v55 }
0x110e   :  { %v3037_v60 = vrot.slane %v1345_v57, 4  ;;  %1347 = vrot.lane.b32.xlu0 %v1345_v57, %s3971_s27 }
0x1110   :  { %v4423_v9 = vsel %vm394_vm5, %v3047_v62, %v3037_v60 }
0x1180   :  { %v1348_v63 = vpop.permute.xlu0 %1347 }
0x1181   :  { %3238 = vmatmul.mubr.msk.f32.vlgmr.msra.gmra.mrb[8].mxu0 %vm300_vm3, %v1348_v63 }
0x1182   :  { %3627 = vmatpush1.bf16.msra.mxu0 %v4131_v52  ;;  %1697 = vmatprep.mubr.f32.mxu0 %v3967_v1 }
0x1183   :  { %3629 = vmatprep.subr.bf16.mxu0 %v4144_v56 }
0x1186   :  { %3631 = vmatpush1.bf16.msra.mxu0 %v4152_v59 }
0x1187   :  { %3639 = vmatprep.subr.bf16.mxu0 %v4122_v40 }
0x1254   :  { %v4431_v16 = vpop.f32.mrb[8].mxu0 }
0x1255   :  { %v1419_v3 = vpop.f32.mrb[9].mxu0 }
0x1256   :  { %v1429_v30 = vrot.slane %v1419_v3, %v4220_v36 }
0x1258   :  { %v1430_v5 = vcombine.high %v1429_v30, %v1429_v30  ;;  %v1437_v6 = vrot.slane %v1429_v30, %v4220_v36 }
0x125a   :  { %v1444_v7 = vrot.slane %v1430_v5, %v4220_v36  ;;  %v1448_v32 = vrot.slane %v1437_v6, %v4228_v44 }
0x125c   :  { %v1452_v8 = vrot.slane %v1444_v7, %v4228_v44  ;;  %v1455_v10 = vadd.f32 %v1448_v32, %v4231_v47 }
0x125e   :  { %v1456_v11 = vadd.f32 %v1452_v8, %v4236_v51  ;;  %3768 = vtanh.f32 %v1455_v10 }
0x1260   :  { %3770 = vtanh.f32 %v1456_v11 }
0x1268   :  { %v3769_v17 = vpop.eup %3768 }
0x1269   :  { %v1459_v18 = vmul.f32 %v3769_v17, %v4256_v4 }
0x126a   :  { %v3771_v20 = vpop.eup %3770 }
0x126b   :  { %v1461_v21 = vsel %vm300_vm3, %v1459_v18, 0.0  ;;  %v1460_v22 = vmul.f32 %v3771_v20, %v4256_v4  ;;  %v1601_v20 = vrot.slane %v4306_v14, 6 }
0x126c   :  { %1462 = vadd.xlane.f32.xlu1 %v1461_v21 }
0x126d   :  { %v1464_v23 = vsel %vm300_vm3, %v1460_v22, 0.0 }
0x126e   :  { %1465 = vadd.xlane.f32.xlu0 %v1464_v23 }
0x12f9   :  { %v1463_v53 = vpop.xlane.xlu1 %1462 }
0x12fa   :  { %v1467_v58 = vmul.f32 1.442695, %v1463_v53 }
0x12fb   :  { %v1466_v24 = vpop.xlane.xlu0 %1465 }
0x12fc   :  { %3772 = vpow2.f32 %v1467_v58  ;;  %v1469_v37 = vmul.f32 1.442695, %v1466_v24 }
0x12fe   :  { %3774 = vpow2.f32 %v1469_v37 }
0x1306   :  { %v3773_v25 = vpop.eup %3772 }
0x1307   :  { %v1476_v29 = vrot.slane %v3773_v25, %v4262_v19 }
0x1308   :  { %v3775_v26 = vpop.eup %3774 }
0x1309   :  { %v1480_v15 = vrot.slane %v3775_v26, %v4262_v19 }
0x130b   :  { %v1481_v31 = vsel %vm134_vm2, %v1480_v15, %v1476_v29 }
0x130c   :  { %v1483_v33 = vsel %vm634_vm7, %v1481_v31, 0.0 }
0x130d   :  { %1484 = vadd.xlane.f32.xlu0 %v1483_v33 }
0x139a   :  { %v1485_v34 = vpop.xlane.xlu0 %1484 }
0x139b   :  { %3776 = vrcp.f32 %v1485_v34 }
0x13a5   :  { %v3777_v38 = vpop.eup %3776 }
0x13a6   :  { %v1495_v35 = vrot.slane %v3777_v38, %v4268_v28  ;;  %v1491_v41 = vrot.slane %v3777_v38, %v4228_v44 }
0x13a8   :  { %v1499_v43 = vmul.f32 %v3775_v26, %v1495_v35  ;;  %v1498_v45 = vmul.f32 %v3773_v25, %v1491_v41 }
0x13aa   :  { %1507 = vperm.xlu0 %3713, %v1499_v43   ;;  %1502 = vperm.xlu1 %3712, %v1498_v45  }
0x1429   :  { %v1508_v46 = vpop.permute.xlu0 %1507  ;;  %v1503_v27 = vpop.permute.xlu1 %1502 }
0x142a   :  { %v1511_v48 = vmul.f32 %v1508_v46, %v4176_v12  ;;  %v1510_v50 = vmul.f32 %v1503_v27, %v4178_v13 }
0x142c   :  { %v1519_v54 = vsel %vm300_vm3, %v1511_v48, 0.0  ;;  %v1512_v55 = vsel %vm300_vm3, %v1510_v50, 0.0 }
0x142d   :  { %v1520_v57 = vrot.slane %v1519_v54, 4  ;;  %v1513_v60 = vrot.slane %v1512_v55, 4 }
0x142f   :  { %v1521_v62 = vadd.f32 %v1520_v57, %v1519_v54  ;;  %v1514_v63 = vadd.f32 %v1513_v60, %v1512_v55 }
0x1431   :  { %v1522_v3 = vrot.slane %v1521_v62, 2  ;;  %v1515_v30 = vrot.slane %v1514_v63, 2 }
0x1433   :  { %v1523_v5 = vadd.f32 %v1522_v3, %v1521_v62  ;;  %v1516_v6 = vadd.f32 %v1515_v30, %v1514_v63 }
0x1435   :  { %v1524_v7 = vrot.slane %v1523_v5, 1  ;;  %v1517_v32 = vrot.slane %v1516_v6, 1 }
0x1437   :  { %v1525_v8 = vadd.f32 %v1524_v7, %v1523_v5  ;;  %v1518_v10 = vadd.f32 %v1517_v32, %v1516_v6 }
0x1439   :  { %v1528_v11 = vsel %vm134_vm2, %v1525_v8, %v1518_v10 }
0x143a   :  { %3452 = vmatmul.mubr.msk.f32.vlgmr.msra.gmra.mrb[16].mxu1 %vm300_vm3, %v1528_v11 }
0x143b   :  { %3634 = vmatpush3.bf16.msra.mxu1 %v4278_v39  ;;  %3462 = vmatprep.mubr.msk.f32.mxu1 %vm3966_vm0, %v3967_v1 }
0x143c   :  { %3635 = vmatprep.subr.bf16.mxu1 %v3965_v0 }
0x143f   :  { %3637 = vmatpush3.bf16.msra.mxu1 %v4288_v42 }
0x1440   :  { %3646 = vmatprep.subr.bf16.mxu1 %v3965_v0 }
0x150d   :  { %v1597_v17 = vpop.f32.mrb[16].mxu1 }
0x150e   :  { %v1598_v18 = vadd.f32 %v1597_v17, %v4431_v16  ;;  %v3453_v21 = vpop.f32.mrb[17].mxu1 }
0x1510   :  { %v1603_v22 = vadd.f32 %v1601_v20, %v1598_v18 }
0x1512   :  { %3778 = vtanh.f32 %v1603_v22  ;;  %v3240_v53 = vmul.f32 -1.442695, %v1603_v22 }
0x1514   :  { %3780 = vpow2.f32 %v3240_v53 }
0x151c   :  { %v3779_v23 = vpop.eup %3778 }
0x151d   :  { %1613 = vrot.lane.b32.xlu1 %v3779_v23, %s3970_s5 }
0x151e   :  { %v3781_v58 = vpop.eup %3780 }
0x151f   :  { %v1607_v24 = vadd.f32 1.0, %v3781_v58 }
0x1521   :  { %3782 = vrcp.f32 %v1607_v24 }
0x152b   :  { %v3783_v37 = vpop.eup %3782 }
0x152c   :  { %v1611_v16 = vmul.f32 %v3783_v37, %v4414_v49 }
0x158f   :  { %v1614_v25 = vpop.permute.xlu1 %1613 }
0x1590   :  { %v1616_v26 = vmul.f32 %v3783_v37, %v1614_v25 }
0x1592   :  { %1618 = vrot.lane.b32.xlu1 %v1616_v26, %s3970_s5 }
0x1604   :  { %v1619_v29 = vpop.permute.xlu1 %1618 }
0x1605   :  { %v4467_v14 = vadd.f32 %v1619_v29, %v1611_v16 }
0x1607   :  { %3784 = vtanh.f32 %v4467_v14 }
0x1611   :  { %v3785_v15 = vpop.eup %3784 }
0x1612   :  { %1624 = vrot.lane.b32.xlu0 %v3785_v15, %s3970_s5 }
0x1684   :  { %v1625_v31 = vpop.permute.xlu0 %1624 }
0x1685   :  { %v1627_v33 = vmul.f32 %v3783_v37, %v1625_v31 }
0x1687   :  { %v3039_v34 = vrot.slane %v1627_v33, 2  ;;  %1629 = vrot.lane.b32.xlu1 %v1627_v33, %s3971_s27 }
0x1689   :  { %v4474_v38 = vsel %vm396_vm6, %v4423_v9, %v3039_v34 }
0x16f9   :  { %v1630_v35 = vpop.permute.xlu1 %1629 }
0x16fa   :  { %3241 = vmatmul.mubr.msk.f32.vlgmr.msra.gmra.mrb[10].mxu0 %vm300_vm3, %v1630_v35 }
0x16fb   :  { %3641 = vmatpush1.bf16.msra.mxu0 %v4131_v52  ;;  %1977 = vmatprep.mubr.f32.mxu0 %v3967_v1 }
0x16fc   :  { %3643 = vmatprep.subr.bf16.mxu0 %v4144_v56 }
0x16ff   :  { %3645 = vmatpush1.bf16.msra.mxu0 %v4152_v59 }
0x1700   :  { %3653 = vmatprep.subr.bf16.mxu0 %v4122_v40 }
0x17cd   :  { %v4482_v49 = vpop.f32.mrb[10].mxu0 }
0x17ce   :  { %v1701_v41 = vpop.f32.mrb[11].mxu0 }
0x17cf   :  { %v1711_v43 = vrot.slane %v1701_v41, %v4220_v36 }
0x17d1   :  { %v1712_v9 = vcombine.high %v1711_v43, %v1711_v43  ;;  %v1719_v45 = vrot.slane %v1711_v43, %v4220_v36 }
0x17d3   :  { %v1726_v46 = vrot.slane %v1712_v9, %v4220_v36  ;;  %v1730_v27 = vrot.slane %v1719_v45, %v4228_v44 }
0x17d5   :  { %v1734_v48 = vrot.slane %v1726_v46, %v4228_v44  ;;  %v1737_v50 = vadd.f32 %v1730_v27, %v4231_v47 }
0x17d7   :  { %v1738_v54 = vadd.f32 %v1734_v48, %v4236_v51  ;;  %3786 = vtanh.f32 %v1737_v50 }
0x17d9   :  { %3788 = vtanh.f32 %v1738_v54 }
0x17e1   :  { %v3787_v55 = vpop.eup %3786 }
0x17e2   :  { %v1741_v57 = vmul.f32 %v3787_v55, %v4256_v4 }
0x17e3   :  { %v3789_v60 = vpop.eup %3788 }
0x17e4   :  { %v1743_v62 = vsel %vm300_vm3, %v1741_v57, 0.0  ;;  %v1742_v63 = vmul.f32 %v3789_v60, %v4256_v4 }
0x17e5   :  { %1744 = vadd.xlane.f32.xlu0 %v1743_v62 }
0x17e6   :  { %v1746_v3 = vsel %vm300_vm3, %v1742_v63, 0.0 }
0x17e7   :  { %1747 = vadd.xlane.f32.xlu1 %v1746_v3 }
0x1872   :  { %v1745_v30 = vpop.xlane.xlu0 %1744 }
0x1873   :  { %v1749_v5 = vmul.f32 1.442695, %v1745_v30 }
0x1874   :  { %v1748_v6 = vpop.xlane.xlu1 %1747 }
0x1875   :  { %3790 = vpow2.f32 %v1749_v5  ;;  %v1751_v7 = vmul.f32 1.442695, %v1748_v6 }
0x1877   :  { %3792 = vpow2.f32 %v1751_v7 }
0x187f   :  { %v3791_v32 = vpop.eup %3790 }
0x1880   :  { %v1758_v10 = vrot.slane %v3791_v32, %v4262_v19 }
0x1881   :  { %v3793_v8 = vpop.eup %3792 }
0x1882   :  { %v1762_v11 = vrot.slane %v3793_v8, %v4262_v19 }
0x1884   :  { %v1763_v17 = vsel %vm134_vm2, %v1762_v11, %v1758_v10 }
0x1885   :  { %v1765_v4 = vsel %vm634_vm7, %v1763_v17, 0.0 }
0x1886   :  { %1766 = vadd.xlane.f32.xlu0 %v1765_v4 }
0x1913   :  { %v1767_v18 = vpop.xlane.xlu0 %1766 }
0x1914   :  { %3794 = vrcp.f32 %v1767_v18 }
0x191e   :  { %v3795_v20 = vpop.eup %3794 }
0x191f   :  { %v1777_v21 = vrot.slane %v3795_v20, %v4268_v28  ;;  %v1773_v22 = vrot.slane %v3795_v20, %v4228_v44 }
0x1921   :  { %v1781_v23 = vmul.f32 %v3793_v8, %v1777_v21  ;;  %v1780_v53 = vmul.f32 %v3791_v32, %v1773_v22 }
0x1923   :  { %1789 = vperm.xlu1 %3712, %v1781_v23   ;;  %1784 = vperm.xlu0 %3713, %v1780_v53  }
0x19a2   :  { %v1790_v58 = vpop.permute.xlu1 %1789  ;;  %v1785_v24 = vpop.permute.xlu0 %1784 }
0x19a3   :  { %v1793_v37 = vmul.f32 %v1790_v58, %v4176_v12  ;;  %v1792_v25 = vmul.f32 %v1785_v24, %v4178_v13 }
0x19a5   :  { %v1801_v26 = vsel %vm300_vm3, %v1793_v37, 0.0  ;;  %v1794_v16 = vsel %vm300_vm3, %v1792_v25, 0.0  ;;  %v4544_v25 = vld [vmem:[%s4771_s8 + $0x3] ss:$0 sm:$0xff] }
0x19a6   :  { %v1802_v29 = vrot.slane %v1801_v26, 4  ;;  %v1795_v15 = vrot.slane %v1794_v16, 4 }
0x19a8   :  { %v1803_v31 = vadd.f32 %v1802_v29, %v1801_v26  ;;  %v1796_v33 = vadd.f32 %v1795_v15, %v1794_v16 }
0x19aa   :  { %v1804_v34 = vrot.slane %v1803_v31, 2  ;;  %v1797_v35 = vrot.slane %v1796_v33, 2 }
0x19ac   :  { %v1805_v41 = vadd.f32 %v1804_v34, %v1803_v31  ;;  %v1798_v43 = vadd.f32 %v1797_v35, %v1796_v33 }
0x19ae   :  { %v1806_v9 = vrot.slane %v1805_v41, 1  ;;  %v1799_v45 = vrot.slane %v1798_v43, 1 }
0x19b0   :  { %v1807_v46 = vadd.f32 %v1806_v9, %v1805_v41  ;;  %v1800_v27 = vadd.f32 %v1799_v45, %v1798_v43 }
0x19b2   :  { %v1810_v48 = vsel %vm134_vm2, %v1807_v46, %v1800_v27 }
0x19b3   :  { %3463 = vmatmul.mubr.msk.f32.vlgmr.msra.gmra.mrb[18].mxu1 %vm300_vm3, %v1810_v48 }
0x19b4   :  { %3648 = vmatpush3.bf16.msra.mxu1 %v4278_v39  ;;  %3473 = vmatprep.mubr.msk.f32.mxu1 %vm3966_vm0, %v3967_v1 }
0x19b5   :  { %3649 = vmatprep.subr.bf16.mxu1 %v3965_v0 }
0x19b8   :  { %3651 = vmatpush3.bf16.msra.mxu1 %v4288_v42 }
0x19b9   :  { %3660 = vmatprep.subr.bf16.mxu1 %v3965_v0 }
0x1a86   :  { %v1879_v50 = vpop.f32.mrb[18].mxu1 }
0x1a87   :  { %v1880_v54 = vadd.f32 %v1879_v50, %v4482_v49  ;;  %v3464_v55 = vpop.f32.mrb[19].mxu1 }
0x1a89   :  { %v1883_v57 = vadd.f32 %v1880_v54, %v4248_v61 }
0x1a8b   :  { %3796 = vtanh.f32 %v1883_v57  ;;  %v3243_v62 = vmul.f32 -1.442695, %v1883_v57 }
0x1a8d   :  { %3798 = vpow2.f32 %v3243_v62 }
0x1a95   :  { %v3797_v60 = vpop.eup %3796 }
0x1a96   :  { %1893 = vrot.lane.b32.xlu1 %v3797_v60, %s3970_s5 }
0x1a97   :  { %v3799_v63 = vpop.eup %3798 }
0x1a98   :  { %v1887_v3 = vadd.f32 1.0, %v3799_v63 }
0x1a9a   :  { %3800 = vrcp.f32 %v1887_v3 }
0x1aa4   :  { %v3801_v30 = vpop.eup %3800 }
0x1aa5   :  { %v1891_v7 = vmul.f32 %v3801_v30, %v4467_v14 }
0x1b08   :  { %v1894_v5 = vpop.permute.xlu1 %1893 }
0x1b09   :  { %v1896_v6 = vmul.f32 %v3801_v30, %v1894_v5 }
0x1b0b   :  { %1898 = vrot.lane.b32.xlu0 %v1896_v6, %s3970_s5 }
0x1b7d   :  { %v1899_v49 = vpop.permute.xlu0 %1898 }
0x1b7e   :  { %v4518_v32 = vadd.f32 %v1899_v49, %v1891_v7 }
0x1b80   :  { %3802 = vtanh.f32 %v4518_v32 }
0x1b8a   :  { %v3803_v8 = vpop.eup %3802 }
0x1b8b   :  { %1904 = vrot.lane.b32.xlu1 %v3803_v8, %s3970_s5 }
0x1bfd   :  { %v1905_v10 = vpop.permute.xlu1 %1904 }
0x1bfe   :  { %v4522_v11 = vmul.f32 %v3801_v30, %v1905_v10 }
0x1c00   :  { %1909 = vrot.lane.b32.xlu0 %v4522_v11, %s3971_s27 }
0x1c72   :  { %v1910_v17 = vpop.permute.xlu0 %1909 }
0x1c73   :  { %3244 = vmatmul.mubr.msk.f32.vlgmr.msra.gmra.mrb[12].mxu0 %vm300_vm3, %v1910_v17 }
0x1c74   :  { %3655 = vmatpush1.bf16.msra.mxu0 %v4131_v52  ;;  %2260 = vmatprep.mubr.f32.mxu0 %v3967_v1 }
0x1c75   :  { %3657 = vmatprep.subr.bf16.mxu0 %v4144_v56 }
0x1c78   :  { %3659 = vmatpush1.bf16.msra.mxu0 %v4152_v59 }
0x1c79   :  { %3667 = vmatprep.subr.bf16.mxu0 %v4122_v40 }
0x1d46   :  { %v4532_v14 = vpop.f32.mrb[12].mxu0 }
0x1d47   :  { %v1981_v4 = vpop.f32.mrb[13].mxu0 }
0x1d48   :  { %v1991_v18 = vrot.slane %v1981_v4, %v4220_v36 }
0x1d4a   :  { %v1992_v20 = vcombine.high %v1991_v18, %v1991_v18  ;;  %v1999_v21 = vrot.slane %v1991_v18, %v4220_v36 }
0x1d4c   :  { %v2006_v22 = vrot.slane %v1992_v20, %v4220_v36  ;;  %v2010_v23 = vrot.slane %v1999_v21, %v4228_v44 }
0x1d4e   :  { %v2014_v53 = vrot.slane %v2006_v22, %v4228_v44  ;;  %v2017_v58 = vadd.f32 %v2010_v23, %v4231_v47 }
0x1d50   :  { %v2018_v24 = vadd.f32 %v2014_v53, %v4236_v51  ;;  %3804 = vtanh.f32 %v2017_v58 }
0x1d52   :  { %3806 = vtanh.f32 %v2018_v24 }
0x1d5a   :  { %v3805_v37 = vpop.eup %3804 }
0x1d5b   :  { %v2021_v26 = vmul.f32 %v4544_v25, %v3805_v37 }
0x1d5c   :  { %v3807_v16 = vpop.eup %3806 }
0x1d5d   :  { %v2023_v29 = vsel %vm300_vm3, %v2021_v26, 0.0  ;;  %v2022_v15 = vmul.f32 %v4544_v25, %v3807_v16  ;;  %v2164_v16 = vrot.slane %v4248_v61, 2 }
0x1d5e   :  { %2024 = vadd.xlane.f32.xlu1 %v2023_v29 }
0x1d5f   :  { %v2026_v31 = vsel %vm300_vm3, %v2022_v15, 0.0 }
0x1d60   :  { %2027 = vadd.xlane.f32.xlu0 %v2026_v31 }
0x1deb   :  { %v2025_v33 = vpop.xlane.xlu1 %2024 }
0x1dec   :  { %v2029_v34 = vmul.f32 1.442695, %v2025_v33 }
0x1ded   :  { %v2028_v35 = vpop.xlane.xlu0 %2027 }
0x1dee   :  { %3808 = vpow2.f32 %v2029_v34  ;;  %v2031_v41 = vmul.f32 1.442695, %v2028_v35 }
0x1df0   :  { %3810 = vpow2.f32 %v2031_v41 }
0x1df8   :  { %v3809_v43 = vpop.eup %3808 }
0x1df9   :  { %v2038_v45 = vrot.slane %v3809_v43, %v4262_v19 }
0x1dfa   :  { %v3811_v9 = vpop.eup %3810 }
0x1dfb   :  { %v2042_v46 = vrot.slane %v3811_v9, %v4262_v19 }
0x1dfd   :  { %v2043_v27 = vsel %vm134_vm2, %v2042_v46, %v2038_v45 }
0x1dfe   :  { %v2045_v48 = vsel %vm634_vm7, %v2043_v27, 0.0 }
0x1dff   :  { %2046 = vadd.xlane.f32.xlu0 %v2045_v48 }
0x1e8c   :  { %v2047_v50 = vpop.xlane.xlu0 %2046 }
0x1e8d   :  { %3812 = vrcp.f32 %v2047_v50 }
0x1e97   :  { %v3813_v54 = vpop.eup %3812 }
0x1e98   :  { %v2057_v55 = vrot.slane %v3813_v54, %v4268_v28  ;;  %v2053_v57 = vrot.slane %v3813_v54, %v4228_v44 }
0x1e9a   :  { %v2061_v60 = vmul.f32 %v3811_v9, %v2057_v55  ;;  %v2060_v62 = vmul.f32 %v3809_v43, %v2053_v57 }
0x1e9c   :  { %2069 = vperm.xlu0 %3713, %v2061_v60   ;;  %2064 = vperm.xlu1 %3712, %v2060_v62  }
0x1f1b   :  { %v2070_v63 = vpop.permute.xlu0 %2069  ;;  %v2065_v3 = vpop.permute.xlu1 %2064 }
0x1f1c   :  { %v2073_v30 = vmul.f32 %v2070_v63, %v4176_v12  ;;  %v2072_v5 = vmul.f32 %v2065_v3, %v4178_v13 }
0x1f1e   :  { %v2081_v6 = vsel %vm300_vm3, %v2073_v30, 0.0  ;;  %v2074_v7 = vsel %vm300_vm3, %v2072_v5, 0.0 }
0x1f1f   :  { %v2082_v49 = vrot.slane %v2081_v6, 4  ;;  %v2075_v8 = vrot.slane %v2074_v7, 4 }
0x1f21   :  { %v2083_v10 = vadd.f32 %v2082_v49, %v2081_v6  ;;  %v2076_v17 = vadd.f32 %v2075_v8, %v2074_v7 }
0x1f23   :  { %v2084_v4 = vrot.slane %v2083_v10, 2  ;;  %v2077_v18 = vrot.slane %v2076_v17, 2 }
0x1f25   :  { %v2085_v20 = vadd.f32 %v2084_v4, %v2083_v10  ;;  %v2078_v21 = vadd.f32 %v2077_v18, %v2076_v17 }
0x1f27   :  { %v2086_v22 = vrot.slane %v2085_v20, 1  ;;  %v2079_v23 = vrot.slane %v2078_v21, 1 }
0x1f29   :  { %v2087_v53 = vadd.f32 %v2086_v22, %v2085_v20  ;;  %v2080_v58 = vadd.f32 %v2079_v23, %v2078_v21 }
0x1f2b   :  { %v2090_v24 = vsel %vm134_vm2, %v2087_v53, %v2080_v58 }
0x1f2c   :  { %3474 = vmatmul.mubr.msk.f32.vlgmr.msra.gmra.mrb[20].mxu1 %vm300_vm3, %v2090_v24 }
0x1f2d   :  { %3662 = vmatpush3.bf16.msra.mxu1 %v4278_v39  ;;  %3484 = vmatprep.mubr.msk.f32.mxu1 %vm3966_vm0, %v3967_v1 }
0x1f2e   :  { %3663 = vmatprep.subr.bf16.mxu1 %v3965_v0 }
0x1f31   :  { %3665 = vmatpush3.bf16.msra.mxu1 %v4288_v42 }
0x1f32   :  { %3674 = vmatprep.subr.bf16.mxu1 %v3965_v0 }
0x1fff   :  { %v2159_v37 = vpop.f32.mrb[20].mxu1 }
0x2000   :  { %v2160_v26 = vadd.f32 %v2159_v37, %v4532_v14  ;;  %v3475_v29 = vpop.f32.mrb[21].mxu1 }
0x2002   :  { %v2166_v15 = vadd.f32 %v2164_v16, %v2160_v26 }
0x2004   :  { %3814 = vtanh.f32 %v2166_v15  ;;  %v3246_v33 = vmul.f32 -1.442695, %v2166_v15 }
0x2006   :  { %3816 = vpow2.f32 %v3246_v33 }
0x200e   :  { %v3815_v31 = vpop.eup %3814 }
0x200f   :  { %2176 = vrot.lane.b32.xlu1 %v3815_v31, %s3970_s5 }
0x2010   :  { %v3817_v34 = vpop.eup %3816 }
0x2011   :  { %v2170_v35 = vadd.f32 1.0, %v3817_v34 }
0x2013   :  { %3818 = vrcp.f32 %v2170_v35 }
0x201d   :  { %v3819_v41 = vpop.eup %3818 }
0x201e   :  { %v2174_v14 = vmul.f32 %v3819_v41, %v4518_v32 }
0x2081   :  { %v2177_v43 = vpop.permute.xlu1 %2176 }
0x2082   :  { %v2179_v9 = vmul.f32 %v3819_v41, %v2177_v43 }
0x2084   :  { %2181 = vrot.lane.b32.xlu1 %v2179_v9, %s3970_s5 }
0x20f6   :  { %v2182_v45 = vpop.permute.xlu1 %2181 }
0x20f7   :  { %v4573_v46 = vadd.f32 %v2182_v45, %v2174_v14 }
0x20f9   :  { %3820 = vtanh.f32 %v4573_v46 }
0x2103   :  { %v3821_v27 = vpop.eup %3820 }
0x2104   :  { %2187 = vrot.lane.b32.xlu0 %v3821_v27, %s3970_s5 }
0x2176   :  { %v2188_v48 = vpop.permute.xlu0 %2187 }
0x2177   :  { %v4577_v50 = vmul.f32 %v3819_v41, %v2188_v48 }
0x2179   :  { %2192 = vrot.lane.b32.xlu1 %v4577_v50, %s3971_s27 }
0x21eb   :  { %v2193_v54 = vpop.permute.xlu1 %2192 }
0x21ec   :  { %3247 = vmatmul.mubr.msk.f32.vlgmr.msra.gmra.mrb[14].mxu0 %vm300_vm3, %v2193_v54 }
0x21ed   :  { %3669 = vmatpush1.bf16.msra.mxu0 %v4131_v52  ;;  %2542 = vmatprep.mubr.f32.mxu0 %v3967_v1 }
0x21ee   :  { %3671 = vmatprep.subr.bf16.mxu0 %v4144_v56 }
0x21f1   :  { %3673 = vmatpush1.bf16.msra.mxu0 %v4152_v59 }
0x21f2   :  { %3681 = vmatprep.subr.bf16.mxu0 %v4122_v40 }
0x22bf   :  { %v4587_v32 = vpop.f32.mrb[14].mxu0 }
0x22c0   :  { %v2264_v55 = vpop.f32.mrb[15].mxu0 }
0x22c1   :  { %v2274_v57 = vrot.slane %v2264_v55, %v4220_v36 }
0x22c3   :  { %v2275_v60 = vcombine.high %v2274_v57, %v2274_v57  ;;  %v2282_v62 = vrot.slane %v2274_v57, %v4220_v36 }
0x22c5   :  { %v2289_v63 = vrot.slane %v2275_v60, %v4220_v36  ;;  %v2293_v3 = vrot.slane %v2282_v62, %v4228_v44 }
0x22c7   :  { %v2297_v30 = vrot.slane %v2289_v63, %v4228_v44  ;;  %v2300_v5 = vadd.f32 %v2293_v3, %v4231_v47 }
0x22c9   :  { %v2301_v6 = vadd.f32 %v2297_v30, %v4236_v51  ;;  %3822 = vtanh.f32 %v2300_v5 }
0x22cb   :  { %3824 = vtanh.f32 %v2301_v6 }
0x22d3   :  { %v3823_v40 = vpop.eup %3822 }
0x22d4   :  { %v2304_v7 = vmul.f32 %v4544_v25, %v3823_v40 }
0x22d5   :  { %v3825_v49 = vpop.eup %3824 }
0x22d6   :  { %v2306_v8 = vsel %vm300_vm3, %v2304_v7, 0.0  ;;  %v2305_v10 = vmul.f32 %v4544_v25, %v3825_v49  ;;  %v2446_v49 = vrot.slane %v4248_v61, 4 }
0x22d7   :  { %2307 = vadd.xlane.f32.xlu0 %v2306_v8 }
0x22d8   :  { %v2309_v17 = vsel %vm300_vm3, %v2305_v10, 0.0 }
0x22d9   :  { %2310 = vadd.xlane.f32.xlu1 %v2309_v17 }
0x2364   :  { %v2308_v4 = vpop.xlane.xlu0 %2307 }
0x2365   :  { %v2312_v18 = vmul.f32 1.442695, %v2308_v4 }
0x2366   :  { %v2311_v20 = vpop.xlane.xlu1 %2310 }
0x2367   :  { %3826 = vpow2.f32 %v2312_v18  ;;  %v2314_v21 = vmul.f32 1.442695, %v2311_v20 }
0x2369   :  { %3828 = vpow2.f32 %v2314_v21 }
0x2371   :  { %v3827_v22 = vpop.eup %3826 }
0x2372   :  { %v2321_v53 = vrot.slane %v3827_v22, %v4262_v19 }
0x2373   :  { %v3829_v23 = vpop.eup %3828 }
0x2374   :  { %v2325_v58 = vrot.slane %v3829_v23, %v4262_v19 }
0x2376   :  { %v2326_v24 = vsel %vm134_vm2, %v2325_v58, %v2321_v53 }
0x2377   :  { %v2328_v37 = vsel %vm634_vm7, %v2326_v24, 0.0 }
0x2378   :  { %2329 = vadd.xlane.f32.xlu0 %v2328_v37  ;;  %v3041_v37 = vrot.slane %v4577_v50, 6 }
0x2405   :  { %v2330_v26 = vpop.xlane.xlu0 %2329 }
0x2406   :  { %3830 = vrcp.f32 %v2330_v26 }
0x2410   :  { %v3831_v16 = vpop.eup %3830 }
0x2411   :  { %v2340_v29 = vrot.slane %v3831_v16, %v4268_v28  ;;  %v2336_v15 = vrot.slane %v3831_v16, %v4228_v44 }
0x2413   :  { %v2344_v31 = vmul.f32 %v3829_v23, %v2340_v29  ;;  %v2343_v33 = vmul.f32 %v3827_v22, %v2336_v15  ;;  %v3050_v15 = vsel %vm392_vm4, %v4522_v11, %v3041_v37 }
0x2415   :  { %2352 = vperm.xlu1 %3712, %v2344_v31   ;;  %2347 = vperm.xlu0 %3713, %v2343_v33  }
0x2494   :  { %v2353_v34 = vpop.permute.xlu1 %2352  ;;  %v2348_v35 = vpop.permute.xlu0 %2347 }
0x2495   :  { %v2356_v41 = vmul.f32 %v2353_v34, %v4176_v12  ;;  %v2355_v43 = vmul.f32 %v2348_v35, %v4178_v13 }
0x2497   :  { %v2364_v9 = vsel %vm300_vm3, %v2356_v41, 0.0  ;;  %v2357_v14 = vsel %vm300_vm3, %v2355_v43, 0.0 }
0x2498   :  { %v2365_v45 = vrot.slane %v2364_v9, 4  ;;  %v2358_v27 = vrot.slane %v2357_v14, 4 }
0x249a   :  { %v2366_v48 = vadd.f32 %v2365_v45, %v2364_v9  ;;  %v2359_v54 = vadd.f32 %v2358_v27, %v2357_v14 }
0x249c   :  { %v2367_v55 = vrot.slane %v2366_v48, 2  ;;  %v2360_v57 = vrot.slane %v2359_v54, 2 }
0x249e   :  { %v2368_v60 = vadd.f32 %v2367_v55, %v2366_v48  ;;  %v2361_v62 = vadd.f32 %v2360_v57, %v2359_v54 }
0x24a0   :  { %v2369_v63 = vrot.slane %v2368_v60, 1  ;;  %v2362_v3 = vrot.slane %v2361_v62, 1 }
0x24a2   :  { %v2370_v30 = vadd.f32 %v2369_v63, %v2368_v60  ;;  %v2363_v5 = vadd.f32 %v2362_v3, %v2361_v62 }
0x24a4   :  { %v2373_v6 = vsel %vm134_vm2, %v2370_v30, %v2363_v5 }
0x24a5   :  { %3485 = vmatmul.mubr.msk.f32.vlgmr.msra.gmra.mrb[22].mxu1 %vm300_vm3, %v2373_v6 }
0x24a6   :  { %3676 = vmatpush3.bf16.msra.mxu1 %v4278_v39  ;;  %3495 = vmatprep.mubr.msk.f32.mxu1 %vm3966_vm0, %v3967_v1 }
0x24a7   :  { %3677 = vmatprep.subr.bf16.mxu1 %v3965_v0 }
0x24aa   :  { %3679 = vmatpush3.bf16.msra.mxu1 %v4288_v42 }
0x24ab   :  { %3688 = vmatprep.subr.bf16.mxu1 %v3965_v0 }
0x2578   :  { %v2442_v40 = vpop.f32.mrb[22].mxu1 }
0x2579   :  { %v2443_v7 = vadd.f32 %v2442_v40, %v4587_v32  ;;  %v3486_v8 = vpop.f32.mrb[23].mxu1 }
0x257b   :  { %v2448_v10 = vadd.f32 %v2446_v49, %v2443_v7 }
0x257d   :  { %3832 = vtanh.f32 %v2448_v10  ;;  %v3249_v4 = vmul.f32 -1.442695, %v2448_v10 }
0x257f   :  { %3834 = vpow2.f32 %v3249_v4 }
0x2587   :  { %v3833_v17 = vpop.eup %3832 }
0x2588   :  { %2458 = vrot.lane.b32.xlu1 %v3833_v17, %s3970_s5 }
0x2589   :  { %v3835_v18 = vpop.eup %3834 }
0x258a   :  { %v2452_v20 = vadd.f32 1.0, %v3835_v18 }
0x258c   :  { %3836 = vrcp.f32 %v2452_v20 }
0x2596   :  { %v3837_v21 = vpop.eup %3836 }
0x2597   :  { %v2456_v32 = vmul.f32 %v3837_v21, %v4573_v46 }
0x25fa   :  { %v2459_v22 = vpop.permute.xlu1 %2458 }
0x25fb   :  { %v2461_v23 = vmul.f32 %v3837_v21, %v2459_v22 }
0x25fd   :  { %2463 = vrot.lane.b32.xlu0 %v2461_v23, %s3970_s5 }
0x266f   :  { %v2464_v53 = vpop.permute.xlu0 %2463 }
0x2670   :  { %v4623_v58 = vadd.f32 %v2464_v53, %v2456_v32 }
0x2672   :  { %3838 = vtanh.f32 %v4623_v58 }
0x267c   :  { %v3839_v24 = vpop.eup %3838 }
0x267d   :  { %2469 = vrot.lane.b32.xlu1 %v3839_v24, %s3970_s5 }
0x26ef   :  { %v2470_v26 = vpop.permute.xlu1 %2469 }
0x26f0   :  { %v2472_v16 = vmul.f32 %v3837_v21, %v2470_v26 }
0x26f2   :  { %v3043_v29 = vrot.slane %v2472_v16, 4  ;;  %2474 = vrot.lane.b32.xlu0 %v2472_v16, %s3971_s27 }
0x26f4   :  { %v4632_v46 = vsel %vm394_vm5, %v3050_v15, %v3043_v29 }
0x2764   :  { %v2475_v31 = vpop.permute.xlu0 %2474 }
0x2765   :  { %3250 = vmatmul.mubr.msk.f32.vlgmr.msra.gmra.mrb[16].mxu0 %vm300_vm3, %v2475_v31 }
0x2766   :  { %3683 = vmatpush1.bf16.msra.mxu0 %v4131_v52  ;;  %2824 = vmatprep.mubr.f32.mxu0 %v3967_v1 }
0x2767   :  { %3685 = vmatprep.subr.bf16.mxu0 %v4144_v56 }
0x276a   :  { %3687 = vmatpush1.bf16.msra.mxu0 %v4152_v59 }
0x276b   :  { %3694 = vmatprep.subr.bf16.mxu0 %v3965_v0 }
0x2838   :  { %v4640_v50 = vpop.f32.mrb[16].mxu0 }
0x2839   :  { %v2546_v33 = vpop.f32.mrb[17].mxu0 }
0x283a   :  { %v2556_v11 = vrot.slane %v2546_v33, %v4220_v36 }
0x283c   :  { %v2557_v34 = vcombine.high %v2556_v11, %v2556_v11  ;;  %v2564_v35 = vrot.slane %v2556_v11, %v4220_v36 }
0x283e   :  { %v2571_v41 = vrot.slane %v2557_v34, %v4220_v36  ;;  %v2575_v52 = vrot.slane %v2564_v35, %v4228_v44 }
0x2840   :  { %v2579_v43 = vrot.slane %v2571_v41, %v4228_v44  ;;  %v2582_v56 = vadd.f32 %v2575_v52, %v4231_v47 }
0x2842   :  { %v2583_v59 = vadd.f32 %v2579_v43, %v4236_v51  ;;  %3840 = vtanh.f32 %v2582_v56  ;;  %v2728_v56 = vrot.slane %v4248_v61, 6 }
0x2844   :  { %3842 = vtanh.f32 %v2583_v59 }
0x284c   :  { %v3841_v9 = vpop.eup %3840 }
0x284d   :  { %v2586_v14 = vmul.f32 %v4544_v25, %v3841_v9 }
0x284e   :  { %v3843_v45 = vpop.eup %3842 }
0x284f   :  { %v2588_v27 = vsel %vm300_vm3, %v2586_v14, 0.0  ;;  %v2587_v48 = vmul.f32 %v4544_v25, %v3843_v45 }
0x2850   :  { %2589 = vadd.xlane.f32.xlu1 %v2588_v27 }
0x2851   :  { %v2591_v54 = vsel %vm300_vm3, %v2587_v48, 0.0 }
0x2852   :  { %2592 = vadd.xlane.f32.xlu0 %v2591_v54 }
0x28dd   :  { %v2590_v55 = vpop.xlane.xlu1 %2589 }
0x28de   :  { %v2594_v57 = vmul.f32 1.442695, %v2590_v55 }
0x28df   :  { %v2593_v60 = vpop.xlane.xlu0 %2592 }
0x28e0   :  { %3844 = vpow2.f32 %v2594_v57  ;;  %v2596_v62 = vmul.f32 1.442695, %v2593_v60 }
0x28e2   :  { %3846 = vpow2.f32 %v2596_v62 }
0x28ea   :  { %v3845_v63 = vpop.eup %3844 }
0x28eb   :  { %v2603_v30 = vrot.slane %v3845_v63, %v4262_v19 }
0x28ec   :  { %v3847_v3 = vpop.eup %3846 }
0x28ed   :  { %v2607_v5 = vrot.slane %v3847_v3, %v4262_v19 }
0x28ef   :  { %v2608_v6 = vsel %vm134_vm2, %v2607_v5, %v2603_v30 }
0x28f0   :  { %v2610_v40 = vsel %vm634_vm7, %v2608_v6, 0.0 }
0x28f1   :  { %2611 = vadd.xlane.f32.xlu0 %v2610_v40 }
0x297e   :  { %v2612_v7 = vpop.xlane.xlu0 %2611 }
0x297f   :  { %3848 = vrcp.f32 %v2612_v7 }
0x2989   :  { %v3849_v49 = vpop.eup %3848 }
0x298a   :  { %v2622_v8 = vrot.slane %v3849_v49, %v4268_v28  ;;  %v2618_v10 = vrot.slane %v3849_v49, %v4228_v44 }
0x298c   :  { %v2626_v17 = vmul.f32 %v3847_v3, %v2622_v8  ;;  %v2625_v4 = vmul.f32 %v3845_v63, %v2618_v10 }
0x298e   :  { %2634 = vperm.xlu0 %3713, %v2626_v17   ;;  %2629 = vperm.xlu1 %3712, %v2625_v4  }
0x2a0d   :  { %v2635_v18 = vpop.permute.xlu0 %2634  ;;  %v2630_v20 = vpop.permute.xlu1 %2629 }
0x2a0e   :  { %v2638_v21 = vmul.f32 %v2635_v18, %v4176_v12  ;;  %v2637_v22 = vmul.f32 %v2630_v20, %v4178_v13 }
0x2a10   :  { %v2646_v23 = vsel %vm300_vm3, %v2638_v21, 0.0  ;;  %v2639_v32 = vsel %vm300_vm3, %v2637_v22, 0.0 }
0x2a11   :  { %v2647_v53 = vrot.slane %v2646_v23, 4  ;;  %v2640_v24 = vrot.slane %v2639_v32, 4 }
0x2a13   :  { %v2648_v37 = vadd.f32 %v2647_v53, %v2646_v23  ;;  %v2641_v26 = vadd.f32 %v2640_v24, %v2639_v32 }
0x2a15   :  { %v2649_v16 = vrot.slane %v2648_v37, 2  ;;  %v2642_v29 = vrot.slane %v2641_v26, 2 }
0x2a17   :  { %v2650_v15 = vadd.f32 %v2649_v16, %v2648_v37  ;;  %v2643_v31 = vadd.f32 %v2642_v29, %v2641_v26 }
0x2a19   :  { %v2651_v33 = vrot.slane %v2650_v15, 1  ;;  %v2644_v11 = vrot.slane %v2643_v31, 1 }
0x2a1b   :  { %v2652_v34 = vadd.f32 %v2651_v33, %v2650_v15  ;;  %v2645_v35 = vadd.f32 %v2644_v11, %v2643_v31 }
0x2a1d   :  { %v2655_v41 = vsel %vm134_vm2, %v2652_v34, %v2645_v35 }
0x2a1e   :  { %3496 = vmatmul.mubr.msk.f32.vlgmr.msra.gmra.mrb[24].mxu1 %vm300_vm3, %v2655_v41 }
0x2a1f   :  { %3690 = vmatpush3.bf16.msra.mxu1 %v4278_v39  ;;  %3506 = vmatprep.mubr.msk.f32.mxu1 %vm3966_vm0, %v3967_v1 }
0x2a20   :  { %3691 = vmatprep.subr.bf16.mxu1 %v3965_v0 }
0x2a23   :  { %3693 = vmatpush3.bf16.msra.mxu1 %v4288_v42 }
0x2af1   :  { %v2724_v52 = vpop.f32.mrb[24].mxu1 }
0x2af2   :  { %v2725_v43 = vadd.f32 %v2724_v52, %v4640_v50  ;;  %v3497_v59 = vpop.f32.mrb[25].mxu1 }
0x2af4   :  { %v2730_v9 = vadd.f32 %v2728_v56, %v2725_v43 }
0x2af6   :  { %3850 = vtanh.f32 %v2730_v9  ;;  %v3252_v45 = vmul.f32 -1.442695, %v2730_v9 }
0x2af8   :  { %3852 = vpow2.f32 %v3252_v45 }
0x2b00   :  { %v3851_v14 = vpop.eup %3850 }
0x2b01   :  { %2740 = vrot.lane.b32.xlu1 %v3851_v14, %s3970_s5 }
0x2b02   :  { %v3853_v39 = vpop.eup %3852 }
0x2b03   :  { %v2734_v27 = vadd.f32 1.0, %v3853_v39 }
0x2b05   :  { %3854 = vrcp.f32 %v2734_v27 }
0x2b0f   :  { %v3855_v48 = vpop.eup %3854 }
0x2b10   :  { %v2738_v42 = vmul.f32 %v3855_v48, %v4623_v58 }
0x2b73   :  { %v2741_v54 = vpop.permute.xlu1 %2740 }
0x2b74   :  { %v2743_v55 = vmul.f32 %v3855_v48, %v2741_v54 }
0x2b76   :  { %2745 = vrot.lane.b32.xlu1 %v2743_v55, %s3970_s5 }
0x2be8   :  { %v2746_v50 = vpop.permute.xlu1 %2745 }
0x2be9   :  { %v4675_v61 = vadd.f32 %v2746_v50, %v2738_v42 }
0x2beb   :  { %3856 = vtanh.f32 %v4675_v61 }
0x2bf5   :  { %v3857_v57 = vpop.eup %3856 }
0x2bf6   :  { %2751 = vrot.lane.b32.xlu0 %v3857_v57, %s3970_s5 }
0x2c68   :  { %v2752_v60 = vpop.permute.xlu0 %2751 }
0x2c69   :  { %v2754_v62 = vmul.f32 %v3855_v48, %v2752_v60 }
0x2c6b   :  { %v3045_v63 = vrot.slane %v2754_v62, 2  ;;  %2756 = vrot.lane.b32.xlu1 %v2754_v62, %s3971_s27  ;;  %v100_v62 = vld [vmem:[%s4770_s7] sm:$0xff] }
0x2c6d   :  { %v4682_v3 = vsel %vm396_vm6, %v4632_v46, %v3045_v63  ;;  %v101_v63 = vld [vmem:[%s4770_s7 + $0x8] sm:$0xff] }
0x2cdd   :  { %v2757_v30 = vpop.permute.xlu1 %2756 }
0x2cde   :  { %3253 = vmatmul.mubr.msk.f32.vlgmr.msra.gmra.mrb[18].mxu0 %vm300_vm3, %v2757_v30  ;;  %v3695_v30 = vpack.c.bf16 %v101_v63, %v100_v62 }
0x2cdf   :  { %3517 = vmatprep.mubr.msk.f32.mxu0 %vm3966_vm0, %v3967_v1 }
0x2ce0   :  { %3696 = vmatpush3.bf16.msra.mxu0 %v3695_v30 }
0x2ce1   :  { %3697 = vmatprep.subr.bf16.mxu0 %v3965_v0 }
0x2db1   :  { %v4687_v58 = vpop.f32.mrb[18].mxu0 }
0x2db2   :  { %v2828_v5 = vpop.f32.mrb[19].mxu0 }
0x2db3   :  { %v2838_v6 = vrot.slane %v2828_v5, %v4220_v36 }
0x2db5   :  { %v2839_v40 = vcombine.high %v2838_v6, %v2838_v6  ;;  %v2846_v7 = vrot.slane %v2838_v6, %v4220_v36 }
0x2db7   :  { %v2853_v49 = vrot.slane %v2839_v40, %v4220_v36  ;;  %v2857_v8 = vrot.slane %v2846_v7, %v4228_v44  ;;  %v102_v40 = vld [vmem:[%s4770_s7 + $0x10] sm:$0xff]  ;;  %v103_v7 = vld [vmem:[%s4770_s7 + $0x18] sm:$0xff] }
0x2db9   :  { %v2861_v46 = vrot.slane %v2853_v49, %v4228_v44  ;;  %v2864_v10 = vadd.f32 %v2857_v8, %v4231_v47  ;;  %v3698_v49 = vpack.c.bf16 %v103_v7, %v102_v40 }
0x2dbb   :  { %v2865_v17 = vadd.f32 %v2861_v46, %v4236_v51  ;;  %3858 = vtanh.f32 %v2864_v10  ;;  %3699 = vmatpush3.bf16.msra.mxu0 %v3698_v49 }
0x2dbd   :  { %3860 = vtanh.f32 %v2865_v17 }
0x2dc5   :  { %v3859_v4 = vpop.eup %3858 }
0x2dc6   :  { %v2868_v18 = vmul.f32 %v4544_v25, %v3859_v4 }
0x2dc7   :  { %v3861_v20 = vpop.eup %3860 }
0x2dc8   :  { %v2870_v21 = vsel %vm300_vm3, %v2868_v18, 0.0  ;;  %v2869_v22 = vmul.f32 %v4544_v25, %v3861_v20 }
0x2dc9   :  { %2871 = vadd.xlane.f32.xlu0 %v2870_v21 }
0x2dca   :  { %v2873_v36 = vsel %vm300_vm3, %v2869_v22, 0.0 }
0x2dcb   :  { %2874 = vadd.xlane.f32.xlu1 %v2873_v36 }
0x2e56   :  { %v2872_v23 = vpop.xlane.xlu0 %2871 }
0x2e57   :  { %v2876_v32 = vmul.f32 1.442695, %v2872_v23 }
0x2e58   :  { %v2875_v53 = vpop.xlane.xlu1 %2874 }
0x2e59   :  { %3862 = vpow2.f32 %v2876_v32  ;;  %v2878_v47 = vmul.f32 1.442695, %v2875_v53 }
0x2e5b   :  { %3864 = vpow2.f32 %v2878_v47 }
0x2e63   :  { %v3863_v51 = vpop.eup %3862 }
0x2e64   :  { %v2885_v37 = vrot.slane %v3863_v51, %v4262_v19 }
0x2e65   :  { %v3865_v24 = vpop.eup %3864 }
0x2e66   :  { %v2889_v26 = vrot.slane %v3865_v24, %v4262_v19 }
0x2e68   :  { %v2890_v16 = vsel %vm134_vm2, %v2889_v26, %v2885_v37 }
0x2e69   :  { %v2892_v25 = vsel %vm634_vm7, %v2890_v16, 0.0 }
0x2e6a   :  { %2893 = vadd.xlane.f32.xlu0 %v2892_v25 }
0x2ef7   :  { %v2894_v29 = vpop.xlane.xlu0 %2893 }
0x2ef8   :  { %3866 = vrcp.f32 %v2894_v29 }
0x2f02   :  { %v3867_v15 = vpop.eup %3866 }
0x2f03   :  { %v2904_v31 = vrot.slane %v3867_v15, %v4268_v28  ;;  %v2900_v33 = vrot.slane %v3867_v15, %v4228_v44 }
0x2f05   :  { %v2908_v11 = vmul.f32 %v3865_v24, %v2904_v31  ;;  %v2907_v34 = vmul.f32 %v3863_v51, %v2900_v33 }
0x2f07   :  { %2916 = vperm.xlu1 %3712, %v2908_v11   ;;  %2911 = vperm.xlu0 %3713, %v2907_v34  }
0x2f86   :  { %v2917_v35 = vpop.permute.xlu1 %2916  ;;  %v2912_v41 = vpop.permute.xlu0 %2911 }
0x2f87   :  { %v2920_v19 = vmul.f32 %v2917_v35, %v4176_v12  ;;  %v2919_v52 = vmul.f32 %v2912_v41, %v4178_v13 }
0x2f89   :  { %v2928_v43 = vsel %vm300_vm3, %v2920_v19, 0.0  ;;  %v2921_v56 = vsel %vm300_vm3, %v2919_v52, 0.0 }
0x2f8a   :  { %v2929_v59 = vrot.slane %v2928_v43, 4  ;;  %v2922_v9 = vrot.slane %v2921_v56, 4 }
0x2f8c   :  { %v2930_v14 = vadd.f32 %v2929_v59, %v2928_v43  ;;  %v2923_v28 = vadd.f32 %v2922_v9, %v2921_v56 }
0x2f8e   :  { %v2931_v45 = vrot.slane %v2930_v14, 2  ;;  %v2924_v44 = vrot.slane %v2923_v28, 2 }
0x2f90   :  { %v2932_v39 = vadd.f32 %v2931_v45, %v2930_v14  ;;  %v2925_v27 = vadd.f32 %v2924_v44, %v2923_v28 }
0x2f92   :  { %v2933_v48 = vrot.slane %v2932_v39, 1  ;;  %v2926_v54 = vrot.slane %v2925_v27, 1 }
0x2f94   :  { %v2934_v55 = vadd.f32 %v2933_v48, %v2932_v39  ;;  %v2927_v42 = vadd.f32 %v2926_v54, %v2925_v27 }
0x2f96   :  { %v2937_v12 = vsel %vm134_vm2, %v2934_v55, %v2927_v42 }
0x2f97   :  { %3507 = vmatmul.mubr.msk.f32.vlgmr.msra.gmra.mrb[26].mxu1 %vm300_vm3, %v2937_v12 }
0x306a   :  { %v3006_v13 = vpop.f32.mrb[26].mxu1 }
0x306b   :  { %v3007_v50 = vadd.f32 %v3006_v13, %v4687_v58  ;;  %v3508_v57 = vpop.f32.mrb[27].mxu1 }
0x306d   :  { %v3010_v60 = vadd.f32 %v3007_v50, %v4251_v2 }
0x306f   :  { %3868 = vtanh.f32 %v3010_v60  ;;  %v3255_v58 = vmul.f32 -1.442695, %v3010_v60 }
0x3071   :  { %3870 = vpow2.f32 %v3255_v58 }
0x3079   :  { %v3869_v5 = vpop.eup %3868 }
0x307a   :  { %3020 = vrot.lane.b32.xlu1 %v3869_v5, %s3970_s5 }
0x307b   :  { %v3871_v6 = vpop.eup %3870 }
0x307c   :  { %v3014_v2 = vadd.f32 1.0, %v3871_v6 }
0x307e   :  { %3872 = vrcp.f32 %v3014_v2 }
0x3088   :  { %v3873_v8 = vpop.eup %3872 }
0x3089   :  { %v3018_v10 = vmul.f32 %v3873_v8, %v4675_v61  ;;  %v3256_v61 = vld [vmem:[%s4771_s8 + $0x5] ss:$0 sm:$0xff]  ;;  %s3972_s8 = smov [#allocation7]  }
0x308a   :  { %s3195_s14 = sshll.u32 %s3972_s8, 4  ;;  %s3196_s14 = int_to_ptr.vmem [resolvable:$true] %s3195_s14 }
0x308b   :  { %s3933_s15 = scalar_lea.vmem %s3196_s14, 384  ;;  %p3938_p3 = scmp.lt.s32.totalorder %s3196_s14, %s3196_s14 }
0x308c   :  { %p3934_p2 = scmp.ne.s32.totalorder %s3196_s14, %s3933_s15  ;;  %p3939_p4 = scmp.lt.s32.totalorder %s3933_s15, %s3933_s15 }
0x308e   :  { %p3940_p5 = por %p3939_p4, %p3938_p3 }
0x3090   :  { %p3941_p6 = pnand %p3940_p5, %p3934_p2 }
0x30ec   :  { %v3021_v0 = vpop.permute.xlu1 %3020 }
0x30ed   :  { %v3023_v46 = vmul.f32 %v3873_v8, %v3021_v0 }
0x30ef   :  { %3025 = vrot.lane.b32.xlu0 %v3023_v46, %s3970_s5 }
0x30f3   :  { %3060 = vrot.lane.b32.xlu0 %v4474_v38, %s3971_s27 }
0x3161   :  { %v3026_v17 = vpop.permute.xlu0 %3025 }
0x3162   :  { %v3028_v4 = vadd.f32 %v3026_v17, %v3018_v10 }
0x3164   :  { %3874 = vtanh.f32 %v3028_v4 }
0x3165   :  { %v3061_v18 = vpop.permute.xlu0 %3060 }
0x3166   :  { %3518 = vmatmul.mubr.msk.f32.vlgmr.msra.gmra.mrb[20].mxu0 %vm300_vm3, %v3061_v18 }
0x3167   :  { %3520 = vmatprep.mubr.msk.f32.mxu0 %vm3966_vm0, %v3967_v1 }
0x316e   :  { %v3875_v20 = vpop.eup %3874 }
0x316f   :  { %3031 = vrot.lane.b32.xlu1 %v3875_v20, %s3970_s5 }
0x3173   :  { %3062 = vrot.lane.b32.xlu1 %v4682_v3, %s3971_s27 }
0x31e1   :  { %v3032_v21 = vpop.permute.xlu1 %3031 }
0x31e2   :  { %v3034_v22 = vmul.f32 %v3873_v8, %v3032_v21 }
0x31e4   :  { %3064 = vrot.lane.b32.xlu0 %v3034_v22, %s3971_s27 }
0x31e5   :  { %v3063_v38 = vpop.permute.xlu1 %3062 }
0x31e6   :  { %3521 = vmatmul.mubr.msk.f32.gmra.mrb[22].mxu0 %vm300_vm3, %v3063_v38 }
0x31e7   :  { %3523 = vmatprep.mubr.msk.f32.mxu0 %vm3966_vm0, %v3967_v1 }
0x3239   :  { %v3138_v36 = vpop.f32.mrb[20].mxu0 }
0x323a   :  { %v3139_v23 = vadd.f32 %v3256_v61, %v3138_v36  ;;  %v3519_v32 = vpop.f32.mrb[21].mxu0 }
0x323c   :  { %3152 = vmax.xlane.f32.xlu0 %v3139_v23 }
0x3256   :  { %v3065_v53 = vpop.permute.xlu0 %3064 }
0x3257   :  { %3524 = vmatmul.mubr.msk.f32.gmra.mrb[24].mxu0 %vm300_vm3, %v3065_v53 }
0x32b9   :  { %v3143_v3 = vpop.f32.mrb[22].mxu0 }
0x32ba   :  { %v3144_v47 = vadd.f32 %v3256_v61, %v3143_v3  ;;  %v3522_v51 = vpop.f32.mrb[23].mxu0 }
0x32bc   :  { %3154 = vmax.xlane.f32.xlu0 %v3144_v47 }
0x32c9   :  { %v3153_v24 = vpop.xlane.xlu0 %3152 }
0x32ca   :  { %v3159_v37 = vsub.f32 %v3139_v23, %v3153_v24 }
0x32cc   :  { %v3162_v26 = vmul.f32 1.442695, %v3159_v37 }
0x32ce   :  { %3876 = vpow2.f32 %v3162_v26 }
0x32d8   :  { %v3877_v15 = vpop.eup %3876 }
0x332a   :  { %v3148_v1 = vpop.f32.mrb[24].mxu0 }
0x332b   :  { %v3149_v16 = vadd.f32 %v3256_v61, %v3148_v1  ;;  %v3525_v25 = vpop.f32.mrb[25].mxu0 }
0x332d   :  { %v3156_v29 = vsel %vm392_vm4, %v3149_v16, -inf }
0x332e   :  { %3157 = vmax.xlane.f32.xlu1 %v3156_v29 }
0x3332   :  { %3168 = vadd.xlane.f32.xlu1 %v3877_v15 }
0x3349   :  { %v3155_v31 = vpop.xlane.xlu0 %3154 }
0x334a   :  { %v3160_v33 = vsub.f32 %v3144_v47, %v3155_v31 }
0x334c   :  { %v3164_v11 = vmul.f32 1.442695, %v3160_v33 }
0x334e   :  { %3878 = vpow2.f32 %v3164_v11 }
0x3358   :  { %v3879_v34 = vpop.eup %3878 }
0x3359   :  { %3170 = vadd.xlane.f32.xlu0 %v3879_v34 }
0x33bb   :  { %v3158_v35 = vpop.xlane.xlu1 %3157 }
0x33bc   :  { %v3161_v41 = vsub.f32 %v3149_v16, %v3158_v35 }
0x33be   :  { %v3166_v19 = vmul.f32 1.442695, %v3161_v41 }
0x33bf   :  { %v3169_v52 = vpop.xlane.xlu1 %3168 }
0x33c0   :  { %3880 = vpow2.f32 %v3166_v19 }
0x33c1   :  { %3882 = vlog2.f32 %v3169_v52 }
0x33ca   :  { %v3881_v43 = vpop.eup %3880 }
0x33cb   :  { %v3883_v56 = vpop.eup %3882  ;;  %v3172_v59 = vsel %vm392_vm4, %v3881_v43, 0.0 }
0x33cc   :  { %v3176_v9 = vmul.f32 0.6931472, %v3883_v56  ;;  %3173 = vadd.xlane.f32.xlu1 %v3172_v59 }
0x33ce   :  { %v3181_v14 = vadd.f32 %v3176_v9, %v3153_v24 }
0x33d0   :  { %v3184_v28 = vsub.f32 %v3139_v23, %v3181_v14 }
0x33d2   :  { %3187 = vst [vmem:[#allocation7] sm:$0xff] %v3184_v28 }
0x33e6   :  { %v3171_v45 = vpop.xlane.xlu0 %3170 }
0x33e7   :  { %3884 = vlog2.f32 %v3171_v45 }
0x33f1   :  { %v3885_v44 = vpop.eup %3884 }
0x33f2   :  { %v3178_v39 = vmul.f32 0.6931472, %v3885_v44 }
0x33f4   :  { %v3182_v27 = vadd.f32 %v3178_v39, %v3155_v31 }
0x33f6   :  { %v3185_v48 = vsub.f32 %v3144_v47, %v3182_v27 }
0x33f8   :  { %3188 = vst [vmem:[#allocation7 + $0x8] sm:$0xff] %v3185_v48 }
0x3459   :  { %v3174_v54 = vpop.xlane.xlu1 %3173 }
0x345a   :  { %3886 = vlog2.f32 %v3174_v54 }
0x3464   :  { %v3887_v55 = vpop.eup %3886 }
0x3465   :  { %v3180_v42 = vmul.f32 0.6931472, %v3887_v55 }
0x3467   :  { %v3183_v12 = vadd.f32 %v3180_v42, %v3158_v35 }
0x3469   :  { %v3186_v13 = vsub.f32 %v3149_v16, %v3183_v12 }
0x346b   :  { %3189 = vst [vmem:[#allocation7 + $0x10] sm:$0x3] %v3186_v13 }
0x346c   :  { %3944 = shalt.err (!%p3941_p6)
}
0x346d   :  { %s3945_s17 = scalar_lea.hbm %s4772_s9, 384 }
0x346e   :  { %p3946_p7 = scmp.ne.s32.totalorder %s4772_s9, %s3945_s17  ;;  %p3949_p8 = scmp.lt.u32.totalorder %s3945_s17, %s4772_s9 }
0x3470   :  { %p3951_p9 = pnand %p3949_p8, %p3946_p7 }
0x3472   :  { %3954 = shalt.err (!%p3951_p9)
}
0x3473   :  { %3201 = dma.vmem_to_hbm [thread:$0]  %s3196_s14, 384, %s4772_s9, [#allocation4], %s3962_s19, %s3962_s19, %s3963_s20  }
0x3474   :  { %3959 = dma.done.wait [#allocation4], 384  }
0x3475   :  { %3960 = vsyncadd [#allocation4], 4294966912 }
0x3476   :  { %3205 = vsyncpa [#allocation3], 1 }
0x3477   :  { %3206 = vsyncpa [#allocation6], 1 }
0x3478   :  { %3207 = vsyncpa [#allocation4], 1 }

</bundles_post_ra>
